<compile_context>
chip_gen: v5e
topology: v5e:2x2
jax: 0.10.0
libtpu: 0.0.40
codegen_flags: <defaults>
</compile_context>

<pallas_src>
import functools

import jax
import jax.numpy as jnp
from jax.experimental import pallas as pl
from jax.experimental.pallas import tpu as pltpu

EPS = 1e-5
# Safe scoped-VMEM budget on every generation (v5e/v6e 128 MiB, v7x 64 MiB
# physical).  This kernel needs ~2 MiB, so 32 MiB leaves ample headroom; only
# raise it on v5e/v6e for much larger problem instances.
_VMEM_LIMIT_BYTES = 32 * 1024 * 1024


def _round_up(x, m):
    return (x + m - 1) // m * m


# ----------------------------------------------------------------------------
# Fused Bottleneck kernel: one grid step = one (batch, T-tile).
# ----------------------------------------------------------------------------
def _bottleneck_kernel(x_ref, w1_ref, b1_ref, w2_ref, b2_ref, w3_ref,
                       wds_ref, b3d_ref, o_ref, y1_scr, acc_scr,
                       *, ksize, tt, pad, t_valid):
    ti = pl.program_id(1)
    halo = tt + 2 * pad

    # x_ref holds the full (zero-padded) T slab for this batch; slice the
    # haloed window for this T-tile.  Start is a multiple of tt (>= 8-aligned).
    start = pl.multiple_of(ti * tt, 8)
    x_halo = x_ref[0, pl.ds(start, halo), :]                 # (halo, Cin) bf16

    # ---- conv1 (1x1) + bn1 + relu ------------------------------------------
    y1 = jnp.dot(x_halo, w1_ref[...], preferred_element_type=jnp.float32)
    y1 = jnp.maximum(y1 + b1_ref[...], 0.0)
    # Rows outside [0, T) are conv2's zero padding (PyTorch pads conv2's
    # *input*, i.e. y1), so force them to zero rather than relu(b1).
    row = (ti * tt - pad) + jax.lax.broadcasted_iota(jnp.int32, (halo, 1), 0)
    y1 = jnp.where((row >= 0) & (row < t_valid), y1, 0.0)
    y1_scr[...] = y1.astype(jnp.bfloat16)

    # ---- conv2 (ksize taps, stride 1) + bn2 + relu ---------------------------
    acc_scr[...] = jnp.zeros_like(acc_scr)
    for k in range(ksize):                                   # unrolled tap loop
        acc_scr[...] += jnp.dot(y1_scr[k:k + tt, :], w2_ref[k],
                                preferred_element_type=jnp.float32)
    y2 = jnp.maximum(acc_scr[...] + b2_ref[...], 0.0).astype(jnp.bfloat16)

    # ---- conv3 (1x1) + bn3 + downsample (1x1) + bn + residual + relu ---------
    x_center = x_halo[pad:pad + tt, :]                       # (tt, Cin) bf16
    out = jnp.dot(y2, w3_ref[...], preferred_element_type=jnp.float32)
    out += jnp.dot(x_center, wds_ref[...], preferred_element_type=jnp.float32)
    out += b3d_ref[...]
    o_ref[0] = jnp.maximum(out, 0.0).astype(o_ref.dtype)


# ----------------------------------------------------------------------------
# Host glue: BN folding (hoisted), forward wrapper
# ----------------------------------------------------------------------------
def _bn_fold(bn):
    s = bn["gamma"] / jnp.sqrt(bn["var"] + EPS)
    return s, bn["beta"] - bn["mean"] * s


def fold_params(p):
    """Fold BN scales into conv weights; keep shifts separate (f32)."""
    s1, b1 = _bn_fold(p["bn1"])
    s2, b2 = _bn_fold(p["bn2"])
    s3, b3 = _bn_fold(p["bn3"])
    sd, bd = _bn_fold(p["bn_ds"])
    return {
        "w1": p["w1"] * s1[None, :],
        "b1": b1,
        "w2": p["w2"] * s2[None, None, :],
        "b2": b2,
        "w3": p["w3"] * s3[None, :],
        "wds": p["w_ds"] * sd[None, :],
        "b3d": b3 + bd,           # conv3-BN shift + downsample-BN shift (fused)
    }


def prepare_params(params, *, ksize):
    """BN-fold + bf16 cast + channel padding.  Call ONCE (hoisted out of the
    per-forward path).  Cout is padded to a multiple of 128; Cin is NOT padded
    (tiny contraction dims are passed as full-extent blocks)."""
    fp = fold_params(params)
    Cin, Cout = fp["w1"].shape
    Coutp = _round_up(Cout, 128)
    dn = Coutp - Cout

    def pad_out(w):            # pad only the output-channel (last) dim
        return jnp.pad(w, [(0, 0)] * (w.ndim - 1) + [(0, dn)]).astype(jnp.bfloat16)

    def pad_shift(s):
        return jnp.pad(s, (0, dn)).reshape(1, Coutp).astype(jnp.float32)

    prepped = {
        "w1": pad_out(fp["w1"]),                                           # (Cin, Coutp)
        "b1": pad_shift(fp["b1"]),
        "w2": jnp.pad(fp["w2"], ((0, 0), (0, dn), (0, dn))).astype(jnp.bfloat16),
        "b2": pad_shift(fp["b2"]),
        "w3": jnp.pad(fp["w3"], ((0, dn), (0, dn))).astype(jnp.bfloat16),  # (Coutp, Coutp)
        "wds": pad_out(fp["wds"]),                                         # (Cin, Coutp)
        "b3d": pad_shift(fp["b3d"]),
    }
    meta = {"in_channels": int(Cin), "out_channels": int(Cout), "ksize": ksize}
    return prepped, meta


def bottleneck_forward(prepped, x_bct, *, ksize=3, stride=1,
                       out_channels=None, tt_max=128):
    """Bottleneck forward.  x_bct: (B, Cin, T) like PyTorch Conv1d input."""
    assert stride == 1 and ksize % 2 == 1  # TODO(synk): stride>1 / even k unsupported
    pad = ksize // 2

    w1 = prepped["w1"]
    Cin, Coutp = w1.shape
    Cout = out_channels if out_channels is not None else Coutp
    B, Cin_x, T = x_bct.shape
    assert Cin_x == Cin

    tt = min(tt_max, _round_up(T, 8))
    Tp = _round_up(T, tt)
    Hp = Tp + 2 * pad

    # Channel-last, zero-padded on T (pad rows for conv halo + tail padding).
    x_btc = jnp.transpose(x_bct, (0, 2, 1)).astype(jnp.bfloat16)      # (B, T, Cin)
    xpad = jnp.pad(x_btc, ((0, 0), (pad, (Tp - T) + pad), (0, 0)))    # (B, Hp, Cin)

    kern = functools.partial(_bottleneck_kernel, ksize=ksize, tt=tt,
                             pad=pad, t_valid=T)
    out = pl.pallas_call(
        kern,
        out_shape=jax.ShapeDtypeStruct((B, Tp, Coutp), jnp.bfloat16),
        grid=(B, Tp // tt),
        in_specs=[
            # Per-batch full-T slab of x (Cin is small); constant along ti, so
            # it is DMA'd once per batch.  TODO(synk): tile T for huge T*Cin.
            pl.BlockSpec((1, Hp, Cin), lambda b, ti: (b, 0, 0)),
            # Weights / shifts: constant block index => VMEM-resident, one DMA.
            pl.BlockSpec((Cin, Coutp), lambda b, ti: (0, 0)),           # w1
            pl.BlockSpec((1, Coutp), lambda b, ti: (0, 0)),             # b1
            pl.BlockSpec((ksize, Coutp, Coutp), lambda b, ti: (0, 0, 0)),  # w2
            pl.BlockSpec((1, Coutp), lambda b, ti: (0, 0)),             # b2
            pl.BlockSpec((Coutp, Coutp), lambda b, ti: (0, 0)),         # w3
            pl.BlockSpec((Cin, Coutp), lambda b, ti: (0, 0)),           # wds
            pl.BlockSpec((1, Coutp), lambda b, ti: (0, 0)),             # b3d
        ],
        out_specs=pl.BlockSpec((1, tt, Coutp), lambda b, ti: (b, ti, 0)),
        scratch_shapes=[
            pltpu.VMEM((tt + 2 * pad, Coutp), jnp.bfloat16),   # y1 halo tile
            pltpu.VMEM((tt, Coutp), jnp.float32),              # conv2 f32 acc
        ],
        compiler_params=pltpu.CompilerParams(
            dimension_semantics=("parallel", "parallel"),
            vmem_limit_bytes=_VMEM_LIMIT_BYTES),
    )(xpad, prepped["w1"], prepped["b1"], prepped["w2"], prepped["b2"],
      prepped["w3"], prepped["wds"], prepped["b3d"])

    out = out[:, :T, :Cout]
    # (B, T, Cout) -> (B, Cout, T) to match the PyTorch layout.  A channel-last
    # bf16 consumer could skip this transpose/cast entirely.
    return jnp.transpose(out, (0, 2, 1)).astype(jnp.float32)


# ----------------------------------------------------------------------------
# Pure-JAX reference (same folded params / bf16 casts) for correctness check
# ----------------------------------------------------------------------------
def bottleneck_reference(params, x_bct, *, ksize=3):
    fp = fold_params(params)
    B, Cin, T = x_bct.shape
    Cout = fp["w1"].shape[1]
    pad = ksize // 2
    f32 = jnp.float32

    x = jnp.transpose(x_bct, (0, 2, 1)).astype(jnp.bfloat16)
    x2 = x.reshape(B * T, Cin)

    y1 = jnp.maximum(jnp.dot(x2, fp["w1"].astype(jnp.bfloat16),
                             preferred_element_type=f32) + fp["b1"][None, :], 0.0)
    y1 = y1.astype(jnp.bfloat16).reshape(B, T, Cout)

    yp = jnp.pad(y1, ((0, 0), (pad, pad), (0, 0)))
    acc = jnp.zeros((B, T, Cout), f32)
    for k in range(ksize):
        acc = acc + jnp.einsum("btc,cd->btd", yp[:, k:k + T],
                               fp["w2"][k].astype(jnp.bfloat16),
                               preferred_element_type=f32)
    y2 = jnp.maximum(acc + fp["b2"][None, None, :], 0.0)
    y2 = y2.astype(jnp.bfloat16).reshape(B * T, Cout)

    out = (jnp.dot(y2, fp["w3"].astype(jnp.bfloat16), preferred_element_type=f32)
           + jnp.dot(x2, fp["wds"].astype(jnp.bfloat16), preferred_element_type=f32)
           + fp["b3d"][None, :])
    out = jnp.maximum(out, 0.0)
    return jnp.transpose(out.reshape(B, T, Cout), (0, 2, 1))


# ----------------------------------------------------------------------------
# Deterministic parameter init (shapes follow the PyTorch __init__)
# ----------------------------------------------------------------------------
def init_params(key, in_size, out_size, ksize):
    keys = iter(jax.random.split(key, 32))

    def nrm(shape, std):
        return std * jax.random.normal(next(keys), shape, jnp.float32)

    def bn():
        return {
            "gamma": jax.random.uniform(next(keys), (out_size,), jnp.float32, 0.5, 1.5),
            "beta": 0.1 * jax.random.normal(next(keys), (out_size,), jnp.float32),
            "mean": 0.1 * jax.random.normal(next(keys), (out_size,), jnp.float32),
            "var": jax.random.uniform(next(keys), (out_size,), jnp.float32, 0.5, 1.5),
        }

    # Conv weights stored in matmul layout (Cin, Cout) / (k, Cin, Cout).
    return {
        "w1": nrm((in_size, out_size), (2.0 / out_size) ** 0.5),
        "bn1": bn(),
        "w2": nrm((ksize, out_size, out_size), (2.0 / (out_size * ksize)) ** 0.5),
        "bn2": bn(),
        "w3": nrm((out_size, out_size), (2.0 / out_size) ** 0.5),
        "bn3": bn(),
        "w_ds": nrm((in_size, out_size), (2.0 / out_size) ** 0.5),
        "bn_ds": bn(),
    }


if __name__ == "__main__":
    key = jax.random.PRNGKey(0)
    kp, kx = jax.random.split(key)

    B, Cin, T, Cout, K = 2, 16, 40, 256, 3
    params = init_params(kp, Cin, Cout, K)
    x = jax.random.normal(kx, (B, Cin, T), jnp.float32)

    # Hoisted once: BN fold + bf16 cast + channel padding (not per-forward).
    prepped, meta = prepare_params(params, ksize=K)

    fwd = jax.jit(functools.partial(bottleneck_forward, ksize=K, stride=1,
                                    out_channels=meta["out_channels"]))
    out = fwd(prepped, x)
    jax.block_until_ready(out)

    ref = bottleneck_reference(params, x, ksize=K)
    assert out.shape == (B, Cout, T), out.shape
    max_err = float(jnp.max(jnp.abs(out - ref)))
    assert jnp.allclose(out, ref, atol=3e-2, rtol=3e-2), max_err
    print("KERNEL_OK")
</pallas_src>

<mosaic_0001>
module attributes {stable_mosaic.version = 11 : i64} {
  func.func @_bottleneck_kernel(%arg0: i32, %arg1: i32, %arg2: memref<1x42x16xbf16, #tpu.memory_space<vmem>>, %arg3: memref<16x256xbf16, #tpu.memory_space<vmem>>, %arg4: memref<1x256xf32, #tpu.memory_space<vmem>>, %arg5: memref<3x256x256xbf16, #tpu.memory_space<vmem>>, %arg6: memref<1x256xf32, #tpu.memory_space<vmem>>, %arg7: memref<256x256xbf16, #tpu.memory_space<vmem>>, %arg8: memref<16x256xbf16, #tpu.memory_space<vmem>>, %arg9: memref<1x256xf32, #tpu.memory_space<vmem>>, %arg10: memref<1x40x256xbf16, #tpu.memory_space<vmem>>, %arg11: memref<42x256xbf16, #tpu.memory_space<vmem>>, %arg12: memref<40x256xf32, #tpu.memory_space<vmem>>) attributes {dimension_semantics = [#tpu.dimension_semantics<parallel>, #tpu.dimension_semantics<parallel>], iteration_bounds = array<i64: 2, 1>, scalar_prefetch = 0 : i64, scratch_operands = 2 : i64, tpu.core_type = #tpu.core_type<tc>, window_params = [{transform_indices = @transform_0, window_bounds = array<i64: 1, 42, 16>}, {pipeline_mode = #tpu.pipeline_mode<synchronous>, transform_indices = @transform_1, window_bounds = array<i64: 16, 256>}, {pipeline_mode = #tpu.pipeline_mode<synchronous>, transform_indices = @transform_2, window_bounds = array<i64: 1, 256>}, {pipeline_mode = #tpu.pipeline_mode<synchronous>, transform_indices = @transform_3, window_bounds = array<i64: 3, 256, 256>}, {pipeline_mode = #tpu.pipeline_mode<synchronous>, transform_indices = @transform_4, window_bounds = array<i64: 1, 256>}, {pipeline_mode = #tpu.pipeline_mode<synchronous>, transform_indices = @transform_5, window_bounds = array<i64: 256, 256>}, {pipeline_mode = #tpu.pipeline_mode<synchronous>, transform_indices = @transform_6, window_bounds = array<i64: 16, 256>}, {pipeline_mode = #tpu.pipeline_mode<synchronous>, transform_indices = @transform_7, window_bounds = array<i64: 1, 256>}, {transform_indices = @transform_8, window_bounds = array<i64: 1, 40, 256>}]} {
    %c40_i32 = arith.constant 40 : i32
    %0 = arith.muli %arg1, %c40_i32 : i32
    %1 = tpu.assume_multiple %0, 8 : i32
    %c0 = arith.constant 0 : index
    %2 = arith.index_cast %1 : i32 to index
    %c0_0 = arith.constant 0 : index
    %3 = vector.load %arg2[%c0, %2, %c0_0] : memref<1x42x16xbf16, #tpu.memory_space<vmem>>, vector<1x42x16xbf16>
    %4 = vector.shape_cast %3 : vector<1x42x16xbf16> to vector<42x16xbf16>
    %c0_1 = arith.constant 0 : index
    %c0_2 = arith.constant 0 : index
    %5 = vector.load %arg3[%c0_1, %c0_2] : memref<16x256xbf16, #tpu.memory_space<vmem>>, vector<16x256xbf16>
    %cst = arith.constant dense<0.000000e+00> : vector<42x256xf32>
    %6 = tpu.matmul %4, %5, %cst {dimension_numbers = #tpu.dot_dimension_numbers<[1], [0], [0], [1], [0, 0, 1, 1], [], []>} : vector<42x16xbf16>, vector<16x256xbf16>, vector<42x256xf32> -> vector<42x256xf32>
    %c0_3 = arith.constant 0 : index
    %c0_4 = arith.constant 0 : index
    %7 = vector.load %arg4[%c0_3, %c0_4] : memref<1x256xf32, #tpu.memory_space<vmem>>, vector<1x256xf32>
    %8 = vector.broadcast %7 : vector<1x256xf32> to vector<42x256xf32>
    %9 = arith.addf %6, %8 : vector<42x256xf32>
    %cst_5 = arith.constant 0.000000e+00 : f32
    %10 = vector.broadcast %cst_5 : f32 to vector<42x256xf32>
    %11 = arith.maximumf %9, %10 : vector<42x256xf32>
    %c40_i32_6 = arith.constant 40 : i32
    %12 = arith.muli %arg1, %c40_i32_6 : i32
    %c1_i32 = arith.constant 1 : i32
    %13 = arith.subi %12, %c1_i32 : i32
    %14 = tpu.iota {dimensions = array<i32: 0>} : vector<42x1xi32>
    %15 = vector.broadcast %13 : i32 to vector<42x1xi32>
    %16 = arith.addi %15, %14 : vector<42x1xi32>
    %c0_i32 = arith.constant 0 : i32
    %17 = vector.broadcast %c0_i32 : i32 to vector<42x1xi32>
    %18 = arith.cmpi sge, %16, %17 : vector<42x1xi32>
    %c40_i32_7 = arith.constant 40 : i32
    %19 = vector.broadcast %c40_i32_7 : i32 to vector<42x1xi32>
    %20 = arith.cmpi slt, %16, %19 : vector<42x1xi32>
    %21 = arith.andi %18, %20 : vector<42x1xi1>
    %cst_8 = arith.constant 0.000000e+00 : f32
    %22 = vector.shape_cast %21 : vector<42x1xi1> to vector<42x1xi1>
    %23 = vector.broadcast %22 : vector<42x1xi1> to vector<42x256xi1>
    %24 = vector.broadcast %cst_8 : f32 to vector<42x256xf32>
    %25 = arith.select %23, %11, %24 : vector<42x256xi1>, vector<42x256xf32>
    %26 = arith.truncf %25 : vector<42x256xf32> to vector<42x256xbf16>
    %c0_9 = arith.constant 0 : index
    %c0_10 = arith.constant 0 : index
    %27 = vector.load %arg11[%c0_9, %c0_10] : memref<42x256xbf16, #tpu.memory_space<vmem>>, vector<42x256xbf16>
    tpu.vector_store %arg11[%c0_9, %c0_10], %26 {strides = array<i32>} : memref<42x256xbf16, #tpu.memory_space<vmem>>, vector<42x256xbf16>,
    %cst_11 = arith.constant 0.000000e+00 : f32
    %28 = vector.broadcast %cst_11 : f32 to vector<40x256xf32>
    %c0_12 = arith.constant 0 : index
    %c0_13 = arith.constant 0 : index
    %29 = vector.load %arg12[%c0_12, %c0_13] : memref<40x256xf32, #tpu.memory_space<vmem>>, vector<40x256xf32>
    tpu.vector_store %arg12[%c0_12, %c0_13], %28 {strides = array<i32>} : memref<40x256xf32, #tpu.memory_space<vmem>>, vector<40x256xf32>,
    %c0_14 = arith.constant 0 : index
    %c0_15 = arith.constant 0 : index
    %30 = vector.load %arg12[%c0_14, %c0_15] : memref<40x256xf32, #tpu.memory_space<vmem>>, vector<40x256xf32>
    %c0_16 = arith.constant 0 : index
    %c0_17 = arith.constant 0 : index
    %31 = vector.load %arg11[%c0_16, %c0_17] : memref<42x256xbf16, #tpu.memory_space<vmem>>, vector<40x256xbf16>
    %c0_18 = arith.constant 0 : index
    %c0_19 = arith.constant 0 : index
    %c0_20 = arith.constant 0 : index
    %32 = vector.load %arg5[%c0_18, %c0_19, %c0_20] : memref<3x256x256xbf16, #tpu.memory_space<vmem>>, vector<1x256x256xbf16>
    %33 = vector.shape_cast %32 : vector<1x256x256xbf16> to vector<256x256xbf16>
    %cst_21 = arith.constant dense<0.000000e+00> : vector<40x256xf32>
    %34 = tpu.matmul %31, %33, %cst_21 {dimension_numbers = #tpu.dot_dimension_numbers<[1], [0], [0], [1], [0, 0, 1, 1], [], []>} : vector<40x256xbf16>, vector<256x256xbf16>, vector<40x256xf32> -> vector<40x256xf32>
    %35 = arith.addf %30, %34 : vector<40x256xf32>
    %c0_22 = arith.constant 0 : index
    %c0_23 = arith.constant 0 : index
    %36 = vector.load %arg12[%c0_22, %c0_23] : memref<40x256xf32, #tpu.memory_space<vmem>>, vector<40x256xf32>
    tpu.vector_store %arg12[%c0_22, %c0_23], %35 {strides = array<i32>} : memref<40x256xf32, #tpu.memory_space<vmem>>, vector<40x256xf32>,
    %c0_24 = arith.constant 0 : index
    %c0_25 = arith.constant 0 : index
    %37 = vector.load %arg12[%c0_24, %c0_25] : memref<40x256xf32, #tpu.memory_space<vmem>>, vector<40x256xf32>
    %c1 = arith.constant 1 : index
    %c0_26 = arith.constant 0 : index
    %38 = vector.load %arg11[%c1, %c0_26] : memref<42x256xbf16, #tpu.memory_space<vmem>>, vector<40x256xbf16>
    %c1_27 = arith.constant 1 : index
    %c0_28 = arith.constant 0 : index
    %c0_29 = arith.constant 0 : index
    %39 = vector.load %arg5[%c1_27, %c0_28, %c0_29] : memref<3x256x256xbf16, #tpu.memory_space<vmem>>, vector<1x256x256xbf16>
    %40 = vector.shape_cast %39 : vector<1x256x256xbf16> to vector<256x256xbf16>
    %cst_30 = arith.constant dense<0.000000e+00> : vector<40x256xf32>
    %41 = tpu.matmul %38, %40, %cst_30 {dimension_numbers = #tpu.dot_dimension_numbers<[1], [0], [0], [1], [0, 0, 1, 1], [], []>} : vector<40x256xbf16>, vector<256x256xbf16>, vector<40x256xf32> -> vector<40x256xf32>
    %42 = arith.addf %37, %41 : vector<40x256xf32>
    %c0_31 = arith.constant 0 : index
    %c0_32 = arith.constant 0 : index
    %43 = vector.load %arg12[%c0_31, %c0_32] : memref<40x256xf32, #tpu.memory_space<vmem>>, vector<40x256xf32>
    tpu.vector_store %arg12[%c0_31, %c0_32], %42 {strides = array<i32>} : memref<40x256xf32, #tpu.memory_space<vmem>>, vector<40x256xf32>,
    %c0_33 = arith.constant 0 : index
    %c0_34 = arith.constant 0 : index
    %44 = vector.load %arg12[%c0_33, %c0_34] : memref<40x256xf32, #tpu.memory_space<vmem>>, vector<40x256xf32>
    %c2 = arith.constant 2 : index
    %c0_35 = arith.constant 0 : index
    %45 = vector.load %arg11[%c2, %c0_35] : memref<42x256xbf16, #tpu.memory_space<vmem>>, vector<40x256xbf16>
    %c2_36 = arith.constant 2 : index
    %c0_37 = arith.constant 0 : index
    %c0_38 = arith.constant 0 : index
    %46 = vector.load %arg5[%c2_36, %c0_37, %c0_38] : memref<3x256x256xbf16, #tpu.memory_space<vmem>>, vector<1x256x256xbf16>
    %47 = vector.shape_cast %46 : vector<1x256x256xbf16> to vector<256x256xbf16>
    %cst_39 = arith.constant dense<0.000000e+00> : vector<40x256xf32>
    %48 = tpu.matmul %45, %47, %cst_39 {dimension_numbers = #tpu.dot_dimension_numbers<[1], [0], [0], [1], [0, 0, 1, 1], [], []>} : vector<40x256xbf16>, vector<256x256xbf16>, vector<40x256xf32> -> vector<40x256xf32>
    %49 = arith.addf %44, %48 : vector<40x256xf32>
    %c0_40 = arith.constant 0 : index
    %c0_41 = arith.constant 0 : index
    %50 = vector.load %arg12[%c0_40, %c0_41] : memref<40x256xf32, #tpu.memory_space<vmem>>, vector<40x256xf32>
    tpu.vector_store %arg12[%c0_40, %c0_41], %49 {strides = array<i32>} : memref<40x256xf32, #tpu.memory_space<vmem>>, vector<40x256xf32>,
    %c0_42 = arith.constant 0 : index
    %c0_43 = arith.constant 0 : index
    %51 = vector.load %arg12[%c0_42, %c0_43] : memref<40x256xf32, #tpu.memory_space<vmem>>, vector<40x256xf32>
    %c0_44 = arith.constant 0 : index
    %c0_45 = arith.constant 0 : index
    %52 = vector.load %arg6[%c0_44, %c0_45] : memref<1x256xf32, #tpu.memory_space<vmem>>, vector<1x256xf32>
    %53 = vector.broadcast %52 : vector<1x256xf32> to vector<40x256xf32>
    %54 = arith.addf %51, %53 : vector<40x256xf32>
    %cst_46 = arith.constant 0.000000e+00 : f32
    %55 = vector.broadcast %cst_46 : f32 to vector<40x256xf32>
    %56 = arith.maximumf %54, %55 : vector<40x256xf32>
    %57 = arith.truncf %56 : vector<40x256xf32> to vector<40x256xbf16>
    %58 = vector.extract_strided_slice %4 {offsets = [1, 0], sizes = [40, 16], strides = [1, 1]} : vector<42x16xbf16> to vector<40x16xbf16>
    %c0_47 = arith.constant 0 : index
    %c0_48 = arith.constant 0 : index
    %59 = vector.load %arg7[%c0_47, %c0_48] : memref<256x256xbf16, #tpu.memory_space<vmem>>, vector<256x256xbf16>
    %cst_49 = arith.constant dense<0.000000e+00> : vector<40x256xf32>
    %60 = tpu.matmul %57, %59, %cst_49 {dimension_numbers = #tpu.dot_dimension_numbers<[1], [0], [0], [1], [0, 0, 1, 1], [], []>} : vector<40x256xbf16>, vector<256x256xbf16>, vector<40x256xf32> -> vector<40x256xf32>
    %c0_50 = arith.constant 0 : index
    %c0_51 = arith.constant 0 : index
    %61 = vector.load %arg8[%c0_50, %c0_51] : memref<16x256xbf16, #tpu.memory_space<vmem>>, vector<16x256xbf16>
    %cst_52 = arith.constant dense<0.000000e+00> : vector<40x256xf32>
    %62 = tpu.matmul %58, %61, %cst_52 {dimension_numbers = #tpu.dot_dimension_numbers<[1], [0], [0], [1], [0, 0, 1, 1], [], []>} : vector<40x16xbf16>, vector<16x256xbf16>, vector<40x256xf32> -> vector<40x256xf32>
    %63 = arith.addf %60, %62 : vector<40x256xf32>
    %c0_53 = arith.constant 0 : index
    %c0_54 = arith.constant 0 : index
    %64 = vector.load %arg9[%c0_53, %c0_54] : memref<1x256xf32, #tpu.memory_space<vmem>>, vector<1x256xf32>
    %65 = vector.broadcast %64 : vector<1x256xf32> to vector<40x256xf32>
    %66 = arith.addf %63, %65 : vector<40x256xf32>
    %cst_55 = arith.constant 0.000000e+00 : f32
    %67 = vector.broadcast %cst_55 : f32 to vector<40x256xf32>
    %68 = arith.maximumf %66, %67 : vector<40x256xf32>
    %69 = arith.truncf %68 : vector<40x256xf32> to vector<40x256xbf16>
    %c0_56 = arith.constant 0 : index
    %c0_57 = arith.constant 0 : index
    %c0_58 = arith.constant 0 : index
    %70 = vector.load %arg10[%c0_56, %c0_57, %c0_58] : memref<1x40x256xbf16, #tpu.memory_space<vmem>>, vector<1x40x256xbf16>
    %71 = vector.shape_cast %70 : vector<1x40x256xbf16> to vector<40x256xbf16>
    %72 = vector.shape_cast %69 : vector<40x256xbf16> to vector<1x40x256xbf16>
    tpu.vector_store %arg10[%c0_56, %c0_57, %c0_58], %72 {strides = array<i32>} : memref<1x40x256xbf16, #tpu.memory_space<vmem>>, vector<1x40x256xbf16>,
    return
  }
  func.func @transform_0(%arg0: i32, %arg1: i32) -> (i32, i32, i32) {
    %c0_i32 = arith.constant 0 : i32
    %c0_i32_0 = arith.constant 0 : i32
    %c0_i32_1 = arith.constant 0 : i32
    return %arg0, %c0_i32, %c0_i32_0 : i32, i32, i32
  }
  func.func @transform_1(%arg0: i32, %arg1: i32) -> (i32, i32) {
    %c0_i32 = arith.constant 0 : i32
    %c0_i32_0 = arith.constant 0 : i32
    %c0_i32_1 = arith.constant 0 : i32
    return %c0_i32, %c0_i32_0 : i32, i32
  }
  func.func @transform_2(%arg0: i32, %arg1: i32) -> (i32, i32) {
    %c0_i32 = arith.constant 0 : i32
    %c0_i32_0 = arith.constant 0 : i32
    %c0_i32_1 = arith.constant 0 : i32
    return %c0_i32, %c0_i32_0 : i32, i32
  }
  func.func @transform_3(%arg0: i32, %arg1: i32) -> (i32, i32, i32) {
    %c0_i32 = arith.constant 0 : i32
    %c0_i32_0 = arith.constant 0 : i32
    %c0_i32_1 = arith.constant 0 : i32
    %c0_i32_2 = arith.constant 0 : i32
    return %c0_i32, %c0_i32_0, %c0_i32_1 : i32, i32, i32
  }
  func.func @transform_4(%arg0: i32, %arg1: i32) -> (i32, i32) {
    %c0_i32 = arith.constant 0 : i32
    %c0_i32_0 = arith.constant 0 : i32
    %c0_i32_1 = arith.constant 0 : i32
    return %c0_i32, %c0_i32_0 : i32, i32
  }
  func.func @transform_5(%arg0: i32, %arg1: i32) -> (i32, i32) {
    %c0_i32 = arith.constant 0 : i32
    %c0_i32_0 = arith.constant 0 : i32
    %c0_i32_1 = arith.constant 0 : i32
    return %c0_i32, %c0_i32_0 : i32, i32
  }
  func.func @transform_6(%arg0: i32, %arg1: i32) -> (i32, i32) {
    %c0_i32 = arith.constant 0 : i32
    %c0_i32_0 = arith.constant 0 : i32
    %c0_i32_1 = arith.constant 0 : i32
    return %c0_i32, %c0_i32_0 : i32, i32
  }
  func.func @transform_7(%arg0: i32, %arg1: i32) -> (i32, i32) {
    %c0_i32 = arith.constant 0 : i32
    %c0_i32_0 = arith.constant 0 : i32
    %c0_i32_1 = arith.constant 0 : i32
    return %c0_i32, %c0_i32_0 : i32, i32
  }
  func.func @transform_8(%arg0: i32, %arg1: i32) -> (i32, i32, i32) {
    %c0_i32 = arith.constant 0 : i32
    %c0_i32_0 = arith.constant 0 : i32
    return %arg0, %arg1, %c0_i32 : i32, i32, i32
  }
}

</mosaic_0001>

<bundles_post_ra>
// kernel: bottleneck_forward.1
= control target key start
LH: loop header
LB: loop body
LE: loop exit
PB: predicated region body
PF: predicated region fallthrough
CT: control target
= control target key end

     0   :  { %13 = vsyncpa [#allocation5], 0  ;;  %s3527_s0 = inlined_call_operand.vmem [shape: bf16[2,42,16], index: 0, kind: input, shape index: {}]   ;;  %s3528_s1 = inlined_call_operand.vmem [shape: bf16[16,256], index: 1, kind: input, shape index: {}]   ;;  %s3529_s2 = inlined_call_operand.vmem [shape: f32[1,256], index: 2, kind: input, shape index: {}]   ;;  %s3530_s3 = inlined_call_operand.hbm [shape: bf16[3,256,256], index: 3, kind: input, shape index: {}]   ;;  %s3531_s4 = inlined_call_operand.vmem [shape: f32[1,256], index: 4, kind: input, shape index: {}]   ;;  %s3532_s5 = inlined_call_operand.hbm [shape: bf16[256,256], index: 5, kind: input, shape index: {}]   ;;  %s3533_s6 = inlined_call_operand.vmem [shape: bf16[16,256], index: 6, kind: input, shape index: {}]   ;;  %s3534_s7 = inlined_call_operand.vmem [shape: f32[1,256], index: 7, kind: input, shape index: {}]   ;;  %s3535_s8 = inlined_call_operand.vmem [shape: bf16[2,40,256], index: 8, kind: output, shape index: {}]  }
   0x1   :  { %14 = vsyncpa [#allocation7], 0  ;;  %s3197_s27 = smov 0   ;;  %s3199_s28 = smov 0  }
   0x2   :  { %s3201_s29 = smov 0  }
   0x3 LB: > { %s2225_s30 = sadd.s32 4294967295, %s3146_s29   ;;  %s32_s9 = sadd.s32 1, %s3142_s28  ;;  %s3146_s29 = sphi %s3201_s29, %s20_s29   ;;  %s3142_s28 = sphi %s3199_s28, %s3539_s28   ;;  %s3138_s27 = sphi %s3197_s27, %s3538_s27  }
   0x4   : > { %p34_p0 = scmp.ge.s32.totalorder %s32_s9, 2  ;;  %p2227_p1 = scmp.ge.s32.totalorder %s3146_s29, 1 }
   0x5   : > { %p238_p2 = scmp.lt.s32.totalorder %s3146_s29, 3  ;;  %p3222_p4 = scmp.eq.s32.totalorder %s2225_s30, 0 }
   0x6   : > { %s3541_s9 = smov (%p34_p0, %s32_s9), 0  ;;  %s255_s14 = sshll.u32 %s3530_s3, 4  ;;  %s256_s14 = int_to_ptr.hbm [resolvable:$true] %s255_s14 }
   0x7   : > { %p3218_p3 = pnand %p2227_p1, %p238_p2  ;;  %s3148_s15 = smov [#allocation4]  }
   0x8   : > { %s257_s16 = sshll.u32 %s3148_s15, 4  ;;  %s272_s19 = sshll.u32 %s3532_s5, 4  ;;  %s258_s16 = int_to_ptr.vmem [resolvable:$true] %s257_s16  ;;  %s273_s19 = int_to_ptr.hbm [resolvable:$true] %s272_s19 }
   0x9   : > { %p3015_p5 = pneg %p3218_p3  ;;  %s3149_s20 = smov 128  }
   0xa   : > { %s3150_s21 = smov 8   ;;  %s3151_s22 = smov [#allocation6]  }
   0xb   : > { %p3016_p6 = pnand %p3222_p4, %p3015_p5  ;;  %s274_s23 = sshll.u32 %s3151_s22, 4  ;;  %s275_s23 = int_to_ptr.vmem [resolvable:$true] %s274_s23 }
   0xc   : > { %304 = sbr.rel (%p3218_p3) target bundleno = 598 (0x256), region = 52 }
   0xd   : > { %3018 = dma.hbm_to_vmem [thread:$0]  (!%p3016_p6), %s256_s14, 12288, %s258_s16, [#allocation5], %s3149_s20, %s3149_s20, %s3150_s21  }
   0xe   : > { %3021 = dma.hbm_to_vmem [thread:$0]  (!%p3016_p6), %s273_s19, 4096, %s275_s23, [#allocation7], %s3149_s20, %s3149_s20, %s3150_s21  }
  0x11   : > { %3129 = dma.done.wait (%p3222_p4), [#allocation5], 12288  }
  0x12   : > { %3131 = vsyncadd (%p3222_p4), [#allocation5], 4294955008 }
  0x13   : > { %3133 = dma.done.wait (%p3222_p4), [#allocation7], 4096  }
  0x14   : > { %3135 = vsyncadd (%p3222_p4), [#allocation7], 4294963200  ;;  %p349_p7 = scmp.lt.s32.totalorder %s3138_s27, 1  ;;  %v2250_v0 = vld [vmem:[%s3528_s1] sm:$0xf]  ;;  %vm410_vm0 = vcmask 130048  }
  0x15   : > { %v2858_v1 = vld [vmem:[%s3528_s1 + $0x4] sm:$0xf0]  ;;  %v2857_v2 = vld [vmem:[%s3528_s1 + $0x4] sm:$0xf]  ;;  %v2252_v4 = vld [vmem:[%s3528_s1 + $0x8] sm:$0xf0] }
  0x16   : > { %s3543_s27 = smov (!%p349_p7, %s3138_s27), 1  ;;  %v2251_v3 = vor.u32 %v2858_v1, %v2250_v0  ;;  %v2255_v5 = vor.u32 %v2857_v2, %v2252_v4  ;;  %v2877_v7 = vld [vmem:[#allocation4 + $0x74] sm:$0xf]  ;;  %v2338_v8 = vld [vmem:[#allocation4 + $0x78] sm:$0xf0]  ;;  %vm1376_vm4 = vcmask 1046528  }
  0x17   : > { %s3005_s24 = smul.u32 24, %s3543_s27  ;;  %v2893_v9 = vld [vmem:[#allocation4 + $0xf4] sm:$0xf]  ;;  %v2341_v10 = vor.u32 %v2877_v7, %v2338_v8  ;;  %v2402_v11 = vld [vmem:[#allocation4 + $0xf8] sm:$0xf0] }
  0x18   : > { %427 = vmatpush.bf16.msra.mxu0 %v2251_v3  ;;  %451 = vmatpush.bf16.msra.mxu1 %v2255_v5  ;;  %v2875_v12 = vld [vmem:[#allocation4 + $0x64] sm:$0xf]  ;;  %v2330_v13 = vld [vmem:[#allocation4 + $0x68] sm:$0xf0]  ;;  %v2405_v14 = vor.u32 %v2893_v9, %v2402_v11  ;;  %v2336_v17 = vld [vmem:[#allocation4 + $0x70] sm:$0xf] }
  0x19   : > { %s3254_s30 = scalar_lea.vmem %s3527_s0, %s3005_s24  ;;  %v2891_v15 = vld [vmem:[#allocation4 + $0xe4] sm:$0xf]  ;;  %v2394_v16 = vld [vmem:[#allocation4 + $0xe8] sm:$0xf0]  ;;  %v2333_v18 = vor.u32 %v2875_v12, %v2330_v13  ;;  %v2878_v19 = vld [vmem:[#allocation4 + $0x74] sm:$0xf0] }
  0x1a   : > { %v2854_v6 = vld [vmem:[%s3254_s30] sm:$0xff]  ;;  %v2894_v21 = vld [vmem:[#allocation4 + $0xf4] sm:$0xf0]  ;;  %v2397_v22 = vor.u32 %v2891_v15, %v2394_v16  ;;  %v2337_v23 = vor.u32 %v2878_v19, %v2336_v17  ;;  %v2322_v26 = vld [vmem:[#allocation4 + $0x58] sm:$0xf0]  ;;  %s3006_s14 = smul.u32 40, %s3543_s27 }
  0x1b   : > { %2256 = vmatmul.msk.bf16.vlgmr.msra.gmra.mxu0 %vm410_vm0, %v2854_v6  ;;  %2259 = vmatmul.msk.bf16.vlgmr.msra.gmra.mxu1 %vm410_vm0, %v2854_v6  ;;  %v2400_v20 = vld [vmem:[#allocation4 + $0xf0] sm:$0xf]  ;;  %v2873_v25 = vld [vmem:[#allocation4 + $0x54] sm:$0xf]  ;;  %v2386_v28 = vld [vmem:[#allocation4 + $0xd8] sm:$0xf0] }
  0x1c   : > { %839 = vmatpush.bf16.msrb.mxu0 %v2341_v10  ;;  %862 = vmatpush.bf16.msrb.mxu1 %v2405_v14  ;;  %v2401_v24 = vor.u32 %v2894_v21, %v2400_v20  ;;  %v2889_v27 = vld [vmem:[#allocation4 + $0xd4] sm:$0xf]  ;;  %v2328_v29 = vld [vmem:[#allocation4 + $0x60] sm:$0xf]  ;;  %v2876_v30 = vld [vmem:[#allocation4 + $0x64] sm:$0xf0]  ;;  %v2325_v34 = vor.u32 %v2873_v25, %v2322_v26  ;;  %s3502_s17 = scalar_lea.vmem %s3535_s8, %s3006_s14 }
  0x1d   : > { %793 = vmatpush.bf16.msra.mxu2 %v2337_v23  ;;  %v2329_v31 = vor.u32 %v2876_v30, %v2328_v29  ;;  %v2392_v32 = vld [vmem:[#allocation4 + $0xe0] sm:$0xf]  ;;  %v2892_v33 = vld [vmem:[#allocation4 + $0xe4] sm:$0xf0]  ;;  %v2389_v36 = vor.u32 %v2889_v27, %v2386_v28  ;;  %v2855_v37 = vld [vmem:[%s3254_s30 + $0x8] sm:$0xff] }
  0x1e   : > { %816 = vmatpush.bf16.msra.mxu3 %v2401_v24  ;;  %v2393_v35 = vor.u32 %v2892_v33, %v2392_v32  ;;  %v2246_v38 = vld [vmem:[%s3254_s30 + $0x10] sm:$0xf]  ;;  %v2856_v39 = vld [vmem:[%s3254_s30 + $0x10] sm:$0x10]  ;;  %v2320_v41 = vld [vmem:[#allocation4 + $0x50] sm:$0xf] }
  0x1f   : > { %v3276_v40 = vor.u32 %v2856_v39, %v2246_v38  ;;  %v2874_v42 = vld [vmem:[#allocation4 + $0x54] sm:$0xf0]  ;;  %v2384_v44 = vld [vmem:[#allocation4 + $0xd0] sm:$0xf]  ;;  %v2871_v47 = vld [vmem:[#allocation4 + $0x44] sm:$0xf]  ;;  %v481_v38 = vlaneseq }
  0x20   : > { %840 = vmatpush.bf16.msrb.mxu0 %v2333_v18  ;;  %863 = vmatpush.bf16.msrb.mxu1 %v2397_v22  ;;  %v2321_v43 = vor.u32 %v2874_v42, %v2320_v41  ;;  %v2890_v45 = vld [vmem:[#allocation4 + $0xd4] sm:$0xf0]  ;;  %v2314_v48 = vld [vmem:[#allocation4 + $0x48] sm:$0xf0]  ;;  %v2887_v49 = vld [vmem:[#allocation4 + $0xc4] sm:$0xf] }
  0x21   : > { %794 = vmatpush.bf16.msra.mxu2 %v2329_v31  ;;  %v2385_v46 = vor.u32 %v2890_v45, %v2384_v44  ;;  %v2317_v50 = vor.u32 %v2871_v47, %v2314_v48  ;;  %v2378_v51 = vld [vmem:[#allocation4 + $0xc8] sm:$0xf0]  ;;  %v2312_v52 = vld [vmem:[#allocation4 + $0x40] sm:$0xf]  ;;  %v2872_v54 = vld [vmem:[#allocation4 + $0x44] sm:$0xf0] }
  0x22   : > { %817 = vmatpush.bf16.msra.mxu3 %v2393_v35  ;;  %v2381_v53 = vor.u32 %v2887_v49, %v2378_v51  ;;  %v2376_v55 = vld [vmem:[#allocation4 + $0xc0] sm:$0xf]  ;;  %v2888_v56 = vld [vmem:[#allocation4 + $0xc4] sm:$0xf0]  ;;  %v2313_v57 = vor.u32 %v2872_v54, %v2312_v52  ;;  %v2869_v59 = vld [vmem:[#allocation4 + $0x34] sm:$0xf] }
  0x23   : > { %v2377_v58 = vor.u32 %v2888_v56, %v2376_v55  ;;  %v2306_v60 = vld [vmem:[#allocation4 + $0x38] sm:$0xf0]  ;;  %v2885_v61 = vld [vmem:[#allocation4 + $0xb4] sm:$0xf]  ;;  %v2304_v0 = vld [vmem:[#allocation4 + $0x30] sm:$0xf] }
  0x24   : > { %841 = vmatpush.bf16.msrb.mxu0 %v2325_v34  ;;  %864 = vmatpush.bf16.msrb.mxu1 %v2389_v36  ;;  %v2309_v62 = vor.u32 %v2869_v59, %v2306_v60  ;;  %v2370_v63 = vld [vmem:[#allocation4 + $0xb8] sm:$0xf0]  ;;  %v2870_v1 = vld [vmem:[#allocation4 + $0x34] sm:$0xf0]  ;;  %v2368_v4 = vld [vmem:[#allocation4 + $0xb0] sm:$0xf] }
  0x25   : > { %795 = vmatpush.bf16.msra.mxu2 %v2321_v43  ;;  %v2373_v2 = vor.u32 %v2885_v61, %v2370_v63  ;;  %v2305_v3 = vor.u32 %v2870_v1, %v2304_v0  ;;  %v2886_v5 = vld [vmem:[#allocation4 + $0xb4] sm:$0xf0]  ;;  %v2296_v7 = vld [vmem:[#allocation4 + $0x20] sm:$0xf]  ;;  %v2868_v8 = vld [vmem:[#allocation4 + $0x24] sm:$0xf0] }
  0x26   : > { %818 = vmatpush.bf16.msra.mxu3 %v2385_v46  ;;  %v2369_v6 = vor.u32 %v2886_v5, %v2368_v4  ;;  %v2360_v9 = vld [vmem:[#allocation4 + $0xa0] sm:$0xf]  ;;  %v2297_v10 = vor.u32 %v2868_v8, %v2296_v7  ;;  %v2884_v11 = vld [vmem:[#allocation4 + $0xa4] sm:$0xf0]  ;;  %v2867_v12 = vld [vmem:[#allocation4 + $0x24] sm:$0xf] }
  0x27   : > { %v2298_v13 = vld [vmem:[#allocation4 + $0x28] sm:$0xf0]  ;;  %v2361_v14 = vor.u32 %v2884_v11, %v2360_v9  ;;  %v2883_v16 = vld [vmem:[#allocation4 + $0xa4] sm:$0xf]  ;;  %v2288_v19 = vld [vmem:[#allocation4 + $0x10] sm:$0xf] }
  0x28   : > { %842 = vmatpush.bf16.msrb.mxu0 %v2317_v50  ;;  %865 = vmatpush.bf16.msrb.mxu1 %v2381_v53  ;;  %v2301_v15 = vor.u32 %v2867_v12, %v2298_v13  ;;  %v2362_v17 = vld [vmem:[#allocation4 + $0xa8] sm:$0xf0]  ;;  %v2866_v20 = vld [vmem:[#allocation4 + $0x14] sm:$0xf0]  ;;  %v2352_v21 = vld [vmem:[#allocation4 + $0x90] sm:$0xf] }
  0x29   : > { %796 = vmatpush.bf16.msra.mxu2 %v2313_v57  ;;  %v2365_v18 = vor.u32 %v2883_v16, %v2362_v17  ;;  %v2289_v22 = vor.u32 %v2866_v20, %v2288_v19  ;;  %v2882_v23 = vld [vmem:[#allocation4 + $0x94] sm:$0xf0]  ;;  %v2865_v24 = vld [vmem:[#allocation4 + $0x14] sm:$0xf]  ;;  %v2290_v25 = vld [vmem:[#allocation4 + $0x18] sm:$0xf0] }
  0x2a   : > { %819 = vmatpush.bf16.msra.mxu3 %v2377_v58  ;;  %v2353_v26 = vor.u32 %v2882_v23, %v2352_v21  ;;  %v2293_v27 = vor.u32 %v2865_v24, %v2290_v25  ;;  %v2881_v28 = vld [vmem:[#allocation4 + $0x94] sm:$0xf]  ;;  %v2354_v29 = vld [vmem:[#allocation4 + $0x98] sm:$0xf0]  ;;  %v2280_v31 = vld [vmem:[#allocation4] sm:$0xf] }
  0x2b   : > { %2257 = vmatmul.msk.bf16.gmra.mxu0 %vm410_vm0, %v2855_v37  ;;  %2260 = vmatmul.msk.bf16.gmra.mxu1 %vm410_vm0, %v2855_v37  ;;  %v2357_v30 = vor.u32 %v2881_v28, %v2354_v29  ;;  %v2864_v32 = vld [vmem:[#allocation4 + $0x4] sm:$0xf0]  ;;  %v2344_v33 = vld [vmem:[#allocation4 + $0x80] sm:$0xf]  ;;  %v2863_v36 = vld [vmem:[#allocation4 + $0x4] sm:$0xf] }
  0x2c   : > { %843 = vmatpush.bf16.msrb.mxu0 %v2309_v62  ;;  %866 = vmatpush.bf16.msrb.mxu1 %v2373_v2  ;;  %v2281_v34 = vor.u32 %v2864_v32, %v2280_v31  ;;  %v2880_v35 = vld [vmem:[#allocation4 + $0x84] sm:$0xf0]  ;;  %v2282_v37 = vld [vmem:[#allocation4 + $0x8] sm:$0xf0]  ;;  %v2879_v42 = vld [vmem:[#allocation4 + $0x84] sm:$0xf] }
  0x2d   : > { %797 = vmatpush.bf16.msra.mxu2 %v2305_v3  ;;  %v2345_v39 = vor.u32 %v2880_v35, %v2344_v33  ;;  %v2285_v41 = vor.u32 %v2863_v36, %v2282_v37  ;;  %v2346_v43 = vld [vmem:[#allocation4 + $0x88] sm:$0xf0]  ;;  %v379_v45 = vld [vmem:[%s3529_s2] sm:$0x3]  ;;  %v3285_v46 = vshrl.u32 %v481_v38, 7 }
  0x2e   : > { %820 = vmatpush.bf16.msra.mxu3 %v2369_v6  ;;  %v2349_v44 = vor.u32 %v2879_v42, %v2346_v43  ;;  %v3287_v47 = vperm.slane %v379_v45, 0  ;;  %v3290_v49 = vperm.slane %v379_v45, 1  ;;  %v2488_v51 = vld [vmem:[#allocation4 + $0x170] sm:$0xf]  ;;  %v2916_v52 = vld [vmem:[#allocation4 + $0x174] sm:$0xf0] }
  0x2f   : > { %v489_v48 = vadd.s32 4294967295, %v3285_v46  ;;  %v2552_v53 = vld [vmem:[#allocation4 + $0x1f0] sm:$0xf]  ;;  %v2489_v56 = vor.u32 %v2916_v52, %v2488_v51  ;;  %v2932_v57 = vld [vmem:[#allocation4 + $0x1f4] sm:$0xf0] }
  0x30   : > { %844 = vmatpush.bf16.msrb.mxu0 %v2301_v15  ;;  %867 = vmatpush.bf16.msrb.mxu1 %v2365_v18  ;;  %v2480_v58 = vld [vmem:[#allocation4 + $0x160] sm:$0xf]  ;;  %v2914_v59 = vld [vmem:[#allocation4 + $0x164] sm:$0xf0]  ;;  %v2553_v61 = vor.u32 %v2932_v57, %v2552_v53  ;;  %v2915_v8 = vld [vmem:[#allocation4 + $0x174] sm:$0xf] }
  0x31   : > { %798 = vmatpush.bf16.msra.mxu2 %v2297_v10  ;;  %vm495_vm1 = vcmp.ge.s32.totalorder %v489_v48, 0  ;;  %v2544_v62 = vld [vmem:[#allocation4 + $0x1e0] sm:$0xf]  ;;  %v2930_v63 = vld [vmem:[#allocation4 + $0x1e4] sm:$0xf0]  ;;  %v2481_v1 = vor.u32 %v2914_v59, %v2480_v58 }
  0x32   : > { %821 = vmatpush.bf16.msra.mxu3 %v2361_v14  ;;  %v2545_v3 = vor.u32 %v2930_v63, %v2544_v62  ;;  %v2490_v9 = vld [vmem:[#allocation4 + $0x178] sm:$0xf0]  ;;  %v2931_v10 = vld [vmem:[#allocation4 + $0x1f4] sm:$0xf]  ;;  %v2472_v15 = vld [vmem:[#allocation4 + $0x150] sm:$0xf] }
  0x33   : > { %v2493_v13 = vor.u32 %v2915_v8, %v2490_v9  ;;  %v2554_v14 = vld [vmem:[#allocation4 + $0x1f8] sm:$0xf0]  ;;  %v2912_v18 = vld [vmem:[#allocation4 + $0x154] sm:$0xf0]  ;;  %v2536_v19 = vld [vmem:[#allocation4 + $0x1d0] sm:$0xf] }
  0x34   : > { %845 = vmatpush.bf16.msrb.mxu0 %v2293_v27  ;;  %868 = vmatpush.bf16.msrb.mxu1 %v2357_v30  ;;  %v2557_v17 = vor.u32 %v2931_v10, %v2554_v14  ;;  %v2928_v20 = vld [vmem:[#allocation4 + $0x1d4] sm:$0xf0]  ;;  %v2913_v24 = vld [vmem:[#allocation4 + $0x164] sm:$0xf]  ;;  %v2482_v25 = vld [vmem:[#allocation4 + $0x168] sm:$0xf0] }
  0x35   : > { %799 = vmatpush.bf16.msra.mxu2 %v2289_v22  ;;  %v2473_v22 = vor.u32 %v2912_v18, %v2472_v15  ;;  %v2537_v23 = vor.u32 %v2928_v20, %v2536_v19  ;;  %v2485_v27 = vor.u32 %v2913_v24, %v2482_v25  ;;  %v2929_v28 = vld [vmem:[#allocation4 + $0x1e4] sm:$0xf]  ;;  %v2546_v29 = vld [vmem:[#allocation4 + $0x1e8] sm:$0xf0]  ;;  %v2464_v35 = vld [vmem:[#allocation4 + $0x140] sm:$0xf] }
  0x36   : > { %822 = vmatpush.bf16.msra.mxu3 %v2353_v26  ;;  %v2549_v30 = vor.u32 %v2929_v28, %v2546_v29  ;;  %v2910_v36 = vld [vmem:[#allocation4 + $0x144] sm:$0xf0]  ;;  %v2528_v37 = vld [vmem:[#allocation4 + $0x1c0] sm:$0xf]  ;;  %v2911_v42 = vld [vmem:[#allocation4 + $0x154] sm:$0xf] }
  0x37   : > { %v2474_v43 = vld [vmem:[#allocation4 + $0x158] sm:$0xf0]  ;;  %v2520_v59 = vld [vmem:[#allocation4 + $0x1b0] sm:$0xf]  ;;  %vm978_vm3 = vsmask.f32 7424 }
  0x38   : > { %846 = vmatpush.bf16.msrb.mxu0 %v2285_v41  ;;  %869 = vmatpush.bf16.msrb.mxu1 %v2349_v44  ;;  %v2926_v41 = vld [vmem:[#allocation4 + $0x1c4] sm:$0xf0]  ;;  %v2477_v48 = vor.u32 %v2911_v42, %v2474_v43  ;;  %v2538_v51 = vld [vmem:[#allocation4 + $0x1d8] sm:$0xf0]  ;;  %v2440_v25 = vld [vmem:[#allocation4 + $0x110] sm:$0xf] }
  0x39   : > { %800 = vmatpush.bf16.msra.mxu2 %v2281_v34  ;;  %v2529_v45 = vor.u32 %v2926_v41, %v2528_v37  ;;  %v2458_v18 = vld [vmem:[#allocation4 + $0x138] sm:$0xf0]  ;;  %v2919_v42 = vld [vmem:[#allocation4 + $0x194] sm:$0xf] }
  0x3a   : > { %823 = vmatpush.bf16.msra.mxu3 %v2345_v39  ;;  %v2465_v39 = vor.u32 %v2910_v36, %v2464_v35  ;;  %v2921_v35 = vld [vmem:[#allocation4 + $0x1a4] sm:$0xf]  ;;  %v2442_v41 = vld [vmem:[#allocation4 + $0x118] sm:$0xf0] }
  0x3b   : > { %2258 = vmatmul.msk.bf16.gmra.mxu0 %vm410_vm0, %v3276_v40  ;;  %2261 = vmatmul.msk.bf16.gmra.mxu1 %vm410_vm0, %v3276_v40 }
  0x3c   : > { %1237 = vmatpush.bf16.msra.mxu0 %v2493_v13  ;;  %1260 = vmatpush.bf16.msra.mxu1 %v2557_v17  ;;  %v2907_v17 = vld [vmem:[#allocation4 + $0x134] sm:$0xf] }
  0x3d   : > { %1191 = vmatpush.bf16.msrb.mxu2 %v2489_v56 }
  0x3e   : > { %1214 = vmatpush.bf16.msrb.mxu3 %v2553_v61  ;;  %v2909_v61 = vld [vmem:[#allocation4 + $0x144] sm:$0xf] }
  0x40   : > { %1238 = vmatpush.bf16.msra.mxu0 %v2485_v27  ;;  %1261 = vmatpush.bf16.msra.mxu1 %v2549_v30  ;;  %v2504_v30 = vld [vmem:[#allocation4 + $0x190] sm:$0xf] }
  0x41   : > { %1192 = vmatpush.bf16.msrb.mxu2 %v2481_v1  ;;  %v2925_v1 = vld [vmem:[#allocation4 + $0x1c4] sm:$0xf] }
  0x42   : > { %1215 = vmatpush.bf16.msrb.mxu3 %v2545_v3 }
  0x44   : > { %1239 = vmatpush.bf16.msra.mxu0 %v2477_v48  ;;  %v2432_v48 = vld [vmem:[#allocation4 + $0x100] sm:$0xf] }
  0x45   : > { %1193 = vmatpush.bf16.msrb.mxu2 %v2473_v22  ;;  %v2923_v22 = vld [vmem:[#allocation4 + $0x1b4] sm:$0xf] }
  0x46   : > { %1216 = vmatpush.bf16.msrb.mxu3 %v2537_v23  ;;  %v2522_v23 = vld [vmem:[#allocation4 + $0x1b8] sm:$0xf0] }
  0x47   : > { %v2525_v28 = vor.u32 %v2923_v22, %v2522_v23  ;;  %v2970_v23 = vld [vmem:[#allocation4 + $0x2f4] sm:$0xf0] }
  0x49   : > { %1194 = vmatpush.bf16.msrb.mxu2 %v2465_v39  ;;  %v2903_v39 = vld [vmem:[#allocation4 + $0x114] sm:$0xf] }
  0x4a   : > { %1217 = vmatpush.bf16.msrb.mxu3 %v2529_v45  ;;  %v2506_v45 = vld [vmem:[#allocation4 + $0x198] sm:$0xf0] }
  0x98   : > { %v429_v50 = vpop.f32.mrf.mxu0  ;;  %v453_v55 = vpop.f32.mrf.mxu1 }
  0x99   : > { %v430_v54 = vadd.f32 %v429_v50, %v3287_v47  ;;  %v454_v60 = vadd.f32 %v453_v55, %v3290_v49  ;;  %v2927_v50 = vld [vmem:[#allocation4 + $0x1d4] sm:$0xf]  ;;  %v2908_v55 = vld [vmem:[#allocation4 + $0x134] sm:$0xf0] }
  0x9a   : > { %v2541_v53 = vor.u32 %v2927_v50, %v2538_v51 }
  0x9b   : > { %v468_v0 = vmax.f32 %v430_v54, 0.0  ;;  %v469_v2 = vmax.f32 %v454_v60, 0.0  ;;  %v2456_v54 = vld [vmem:[#allocation4 + $0x130] sm:$0xf]  ;;  %v2924_v60 = vld [vmem:[#allocation4 + $0x1b4] sm:$0xf0] }
  0x9c   : > { %v2457_v58 = vor.u32 %v2908_v55, %v2456_v54  ;;  %1262 = vmatpush.bf16.msra.mxu1 %v2541_v53  ;;  %v2521_v63 = vor.u32 %v2924_v60, %v2520_v59  ;;  %v2902_v53 = vld [vmem:[#allocation4 + $0x104] sm:$0xf0]  ;;  %v2496_v54 = vld [vmem:[#allocation4 + $0x180] sm:$0xf]  ;;  %v2901_v60 = vld [vmem:[#allocation4 + $0x104] sm:$0xf] }
  0x9d   : > { %v525_v4 = vsel %vm495_vm1, %v468_v0, 0.0  ;;  %v526_v5 = vsel %vm495_vm1, %v469_v2, 0.0  ;;  %v2466_v0 = vld [vmem:[#allocation4 + $0x148] sm:$0xf0]  ;;  %v2918_v55 = vld [vmem:[#allocation4 + $0x184] sm:$0xf0] }
  0x9e   : > { %v537_v6 = vpack.c.bf16 %v526_v5, %v525_v4  ;;  %v2530_v2 = vld [vmem:[#allocation4 + $0x1c8] sm:$0xf0]  ;;  %v2469_v5 = vor.u32 %v2909_v61, %v2466_v0  ;;  %1195 = vmatpush.bf16.msrb.mxu2 %v2457_v58  ;;  %1218 = vmatpush.bf16.msrb.mxu3 %v2521_v63  ;;  %v2433_v58 = vor.u32 %v2902_v53, %v2432_v48 }
  0x9f   : > { %v2533_v10 = vor.u32 %v2925_v1, %v2530_v2  ;;  %v2497_v59 = vor.u32 %v2918_v55, %v2496_v54  ;;  %v2434_v61 = vld [vmem:[#allocation4 + $0x108] sm:$0xf0]  ;;  %v2509_v0 = vor.u32 %v2919_v42, %v2506_v45  ;;  %v2917_v2 = vld [vmem:[#allocation4 + $0x184] sm:$0xf]  ;;  %v2688_v42 = vld [vmem:[#allocation4 + $0x2d0] sm:$0xf] }
  0xa0   : > { %v431_v7 = vpop.f32.mrf.mxu0  ;;  %543 = vst [vmem:[#allocation2] sm:$0xff] %v537_v6  ;;  %v455_v12 = vpop.f32.mrf.mxu1  ;;  %v2448_v6 = vld [vmem:[#allocation4 + $0x120] sm:$0xf]  ;;  %1240 = vmatpush.bf16.msra.mxu0 %v2469_v5  ;;  %v2437_v1 = vor.u32 %v2901_v60, %v2434_v61  ;;  %v2634_v48 = vld [vmem:[#allocation4 + $0x268] sm:$0xf0] }
  0xa1   : > { %v432_v11 = vadd.f32 %v431_v7, %v3287_v47  ;;  %v456_v16 = vadd.f32 %v455_v12, %v3290_v49  ;;  %v2512_v12 = vld [vmem:[#allocation4 + $0x1a0] sm:$0xf]  ;;  %1263 = vmatpush.bf16.msra.mxu1 %v2533_v10 }
  0xa3   : > { %v470_v21 = vmax.f32 %v432_v11, 0.0  ;;  %v471_v26 = vmax.f32 %v456_v16, 0.0  ;;  %v2906_v11 = vld [vmem:[#allocation4 + $0x124] sm:$0xf0] }
  0xa4   : > { %v2449_v15 = vor.u32 %v2906_v11, %v2448_v6  ;;  %v2922_v16 = vld [vmem:[#allocation4 + $0x1a4] sm:$0xf0] }
  0xa5   : > { %v538_v31 = vpack.c.bf16 %v471_v26, %v470_v21  ;;  %v2513_v20 = vor.u32 %v2922_v16, %v2512_v12  ;;  %v2461_v21 = vor.u32 %v2907_v17, %v2458_v18  ;;  %v2904_v26 = vld [vmem:[#allocation4 + $0x114] sm:$0xf0]  ;;  %1264 = vmatpush.bf16.msra.mxu1 %v2525_v28  ;;  %v2640_v17 = vld [vmem:[#allocation4 + $0x270] sm:$0xf]  ;;  %v2696_v28 = vld [vmem:[#allocation4 + $0x2e0] sm:$0xf] }
  0xa6   : > { %1196 = vmatpush.bf16.msrb.mxu2 %v2449_v15  ;;  %v2441_v29 = vor.u32 %v2904_v26, %v2440_v25  ;;  %v2632_v25 = vld [vmem:[#allocation4 + $0x260] sm:$0xf]  ;;  %v2952_v26 = vld [vmem:[#allocation4 + $0x264] sm:$0xf0] }
  0xa7   : > { %544 = vst [vmem:[#allocation2 + $0x8] sm:$0xff] %v538_v31  ;;  %v2264_v56 = vld [vmem:[#allocation2] sm:$0xf]  ;;  %v2859_v57 = vld [vmem:[#allocation2 + $0x4] sm:$0xf]  ;;  %1219 = vmatpush.bf16.msrb.mxu3 %v2513_v20  ;;  %1241 = vmatpush.bf16.msra.mxu0 %v2461_v21 }
  0xa8   : > { %v434_v32 = vpop.f32.mrf.mxu0  ;;  %v458_v34 = vpop.f32.mrf.mxu1  ;;  %v2920_v31 = vld [vmem:[#allocation4 + $0x194] sm:$0xf0]  ;;  %v2704_v20 = vld [vmem:[#allocation4 + $0x2f0] sm:$0xf] }
  0xa9   : > { %v435_v33 = vadd.f32 %v434_v32, %v3287_v47  ;;  %v459_v38 = vadd.f32 %v458_v34, %v3290_v49  ;;  %v2505_v32 = vor.u32 %v2920_v31, %v2504_v30  ;;  %v2450_v34 = vld [vmem:[#allocation4 + $0x128] sm:$0xf0]  ;;  %v2953_v30 = vld [vmem:[#allocation4 + $0x274] sm:$0xf] }
  0xaa   : > { %1197 = vmatpush.bf16.msrb.mxu2 %v2441_v29  ;;  %v2968_v29 = vld [vmem:[#allocation4 + $0x2e4] sm:$0xf0] }
  0xab   : > { %v472_v44 = vmax.f32 %v435_v33, 0.0  ;;  %v473_v52 = vmax.f32 %v459_v38, 0.0  ;;  %v2905_v33 = vld [vmem:[#allocation4 + $0x124] sm:$0xf]  ;;  %v2514_v38 = vld [vmem:[#allocation4 + $0x1a8] sm:$0xf0]  ;;  %1220 = vmatpush.bf16.msrb.mxu3 %v2505_v32  ;;  %v2697_v31 = vor.u32 %v2968_v29, %v2696_v28 }
  0xac   : > { %v2453_v37 = vor.u32 %v2905_v33, %v2450_v34  ;;  %v2642_v32 = vld [vmem:[#allocation4 + $0x278] sm:$0xf0]  ;;  %v2969_v33 = vld [vmem:[#allocation4 + $0x2f4] sm:$0xf] }
  0xad   : > { %v539_v62 = vpack.c.bf16 %v473_v52, %v472_v44  ;;  %v2517_v44 = vor.u32 %v2921_v35, %v2514_v38  ;;  %v2445_v52 = vor.u32 %v2903_v39, %v2442_v41  ;;  %v2706_v34 = vld [vmem:[#allocation4 + $0x2f8] sm:$0xf0]  ;;  %v2645_v35 = vor.u32 %v2953_v30, %v2642_v32  ;;  %v2950_v38 = vld [vmem:[#allocation4 + $0x254] sm:$0xf0]  ;;  %v2600_v30 = vld [vmem:[#allocation4 + $0x220] sm:$0xf] }
  0xae   : > { %v2860_v3 = vld [vmem:[#allocation2 + $0x4] sm:$0xf0]  ;;  %v2266_v4 = vld [vmem:[#allocation2 + $0x8] sm:$0xf0]  ;;  %1242 = vmatpush.bf16.msra.mxu0 %v2453_v37  ;;  %1198 = vmatpush.bf16.msrb.mxu2 %v2433_v58  ;;  %v2624_v37 = vld [vmem:[#allocation4 + $0x250] sm:$0xf] }
  0xaf   : > { %545 = vst [vmem:[#allocation2 + $0x10] sm:$0xff] %v539_v62  ;;  %v2265_v8 = vor.u32 %v2860_v3, %v2264_v56  ;;  %v2269_v9 = vor.u32 %v2859_v57, %v2266_v4  ;;  %v487_v57 = vadd.s32 40, %v3285_v46  ;;  %1265 = vmatpush.bf16.msra.mxu1 %v2517_v44  ;;  %1221 = vmatpush.bf16.msrb.mxu3 %v2497_v59  ;;  %v2498_v3 = vld [vmem:[#allocation4 + $0x188] sm:$0xf0]  ;;  %v2951_v44 = vld [vmem:[#allocation4 + $0x264] sm:$0xf] }
  0xb0   : > { %v436_v7 = vpop.f32.mrf.mxu0  ;;  %v460_v14 = vpop.f32.mrf.mxu1  ;;  %v2501_v12 = vor.u32 %v2917_v2, %v2498_v3  ;;  %v2625_v45 = vor.u32 %v2950_v38, %v2624_v37  ;;  %v2637_v55 = vor.u32 %v2951_v44, %v2634_v48  ;;  %v2410_v61 = vld [vmem:[#allocation2 + $0x8] sm:$0xf0]  ;;  %v2664_v32 = vld [vmem:[#allocation4 + $0x2a0] sm:$0xf]  ;;  %v2960_v37 = vld [vmem:[#allocation4 + $0x2a4] sm:$0xf0] }
  0xb1   : > { %v437_v13 = vadd.f32 %v436_v7, %v3287_v47  ;;  %v461_v19 = vadd.f32 %v460_v14, %v3290_v49  ;;  %801 = vmatmul.bf16.vlgmr.msra.gmra.mxu2 %v2265_v8  ;;  %824 = vmatmul.bf16.vlgmr.msra.gmra.mxu3 %v2269_v9  ;;  %v494_v5 = vadd.s32 4294967295, %v487_v57  ;;  %v2408_v57 = vld [vmem:[#allocation2] sm:$0xf] }
  0xb2   : > { %847 = vmatmul.bf16.vlgmr.msrb.gmra.mxu0 %v2265_v8  ;;  %870 = vmatmul.bf16.vlgmr.msrb.gmra.mxu1 %v2269_v9 }
  0xb3   : > { %v474_v24 = vmax.f32 %v437_v13, 0.0  ;;  %v475_v27 = vmax.f32 %v461_v19, 0.0  ;;  %1243 = vmatpush.bf16.msra.mxu0 %v2445_v52  ;;  %1266 = vmatpush.bf16.msra.mxu1 %v2509_v0  ;;  %vm506_vm2 = vcmp.lt.s32.totalorder %v494_v5, 40  ;;  %v2954_v19 = vld [vmem:[#allocation4 + $0x274] sm:$0xf0] }
  0xb4   : > { %v2641_v22 = vor.u32 %v2954_v19, %v2640_v17  ;;  %v2896_v52 = vld [vmem:[#allocation2 + $0x4] sm:$0xf0]  ;;  %v2608_v19 = vld [vmem:[#allocation4 + $0x230] sm:$0xf] }
  0xb5   : > { %v540_v36 = vpack.c.bf16 %v475_v27, %v474_v24 }
  0xb6   : > { %v2272_v6 = vld [vmem:[#allocation2 + $0x10] sm:$0xf]  ;;  %v2861_v46 = vld [vmem:[#allocation2 + $0x14] sm:$0xf]  ;;  %1553 = vmatpush.bf16.msra.mxu2 %v2641_v22 }
  0xb7   : > { %546 = vst [vmem:[#allocation2 + $0x18] sm:$0xff] %v540_v36  ;;  %1244 = vmatpush.bf16.msra.mxu0 %v2437_v1  ;;  %1267 = vmatpush.bf16.msra.mxu1 %v2501_v12  ;;  %v2709_v36 = vor.u32 %v2969_v33, %v2706_v34  ;;  %v2416_v60 = vld [vmem:[#allocation2 + $0x10] sm:$0xf]  ;;  %v2895_v1 = vld [vmem:[#allocation2 + $0x4] sm:$0xf] }
  0xb8   : > { %v439_v43 = vpop.f32.mrf.mxu0  ;;  %v463_v51 = vpop.f32.mrf.mxu1  ;;  %v2897_v2 = vld [vmem:[#allocation2 + $0x14] sm:$0xf]  ;;  %v3314_v3 = vor.u32 %v2895_v1, %v2410_v61  ;;  %v2942_v1 = vld [vmem:[#allocation4 + $0x214] sm:$0xf0] }
  0xb9   : > { %v440_v50 = vadd.f32 %v439_v43, %v3287_v47  ;;  %v464_v56 = vadd.f32 %v463_v51, %v3290_v49  ;;  %v2966_v43 = vld [vmem:[#allocation4 + $0x2d4] sm:$0xf0]  ;;  %v2698_v51 = vld [vmem:[#allocation4 + $0x2e8] sm:$0xf0] }
  0xba   : > { %v2689_v54 = vor.u32 %v2966_v43, %v2688_v42  ;;  %v994_v12 = vshll.u32 %v3314_v3, 16  ;;  %v2665_v42 = vor.u32 %v2960_v37, %v2664_v32 }
  0xbb   : > { %v476_v62 = vmax.f32 %v440_v50, 0.0  ;;  %v477_v63 = vmax.f32 %v464_v56, 0.0  ;;  %1599 = vmatpush.bf16.msrb.mxu0 %v2645_v35  ;;  %v2967_v50 = vld [vmem:[#allocation4 + $0x2e4] sm:$0xf]  ;;  %1622 = vmatpush.bf16.msrb.mxu1 %v2709_v36 }
  0xbc   : > { %v2701_v56 = vor.u32 %v2967_v50, %v2698_v51  ;;  %v996_v34 = vrot.slane %v994_v12, 1 }
  0xbd   : > { %v3303_v4 = vpack.c.bf16 %v477_v63, %v476_v62  ;;  %v3310_v63 = vor.u32 %v2896_v52, %v2408_v57 }
  0xbe   : > { %v2862_v7 = vld [vmem:[#allocation2 + $0x14] sm:$0xf0]  ;;  %v2274_v8 = vld [vmem:[#allocation2 + $0x18] sm:$0xf0] }
  0xbf   : > { %547 = vst [vmem:[#allocation2 + $0x20] sm:$0xff] %v3303_v4  ;;  %v2273_v10 = vor.u32 %v2862_v7, %v2272_v6  ;;  %v2277_v11 = vor.u32 %v2861_v46, %v2274_v8  ;;  %v619_v39 = vunpack.c.l.b16 %v3303_v4  ;;  %v620_v41 = vunpack.c.h.b16 %v3303_v4  ;;  %v2898_v53 = vld [vmem:[#allocation2 + $0x14] sm:$0xf0]  ;;  %v2418_v62 = vld [vmem:[#allocation2 + $0x18] sm:$0xf0]  ;;  %1600 = vmatpush.bf16.msrb.mxu0 %v2637_v55  ;;  %1623 = vmatpush.bf16.msrb.mxu1 %v2701_v56 }
  0xc0   : > { %v441_v9 = vpop.f32.mrf.mxu0  ;;  %v465_v14 = vpop.f32.mrf.mxu1  ;;  %v3312_v0 = vor.u32 %v2898_v53, %v2416_v60  ;;  %v3316_v4 = vor.u32 %v2897_v2, %v2418_v62  ;;  %v982_v5 = vshll.u32 %v3310_v63, 16  ;;  %v2616_v7 = vld [vmem:[#allocation4 + $0x240] sm:$0xf]  ;;  %v2948_v46 = vld [vmem:[#allocation4 + $0x244] sm:$0xf0]  ;;  %v980_v43 = vshrl.u32 %v3310_v63, 16 }
  0xc1   : > { %v442_v13 = vadd.f32 %v441_v9, %v3287_v47  ;;  %v466_v15 = vadd.f32 %v465_v14, %v3290_v49  ;;  %806 = vmatmul.bf16.gmra.mxu2 %v2273_v10  ;;  %829 = vmatmul.bf16.gmra.mxu3 %v2277_v11  ;;  %v2705_v47 = vor.u32 %v2970_v23, %v2704_v20  ;;  %v2680_v9 = vld [vmem:[#allocation4 + $0x2c0] sm:$0xf]  ;;  %v2946_v20 = vld [vmem:[#allocation4 + $0x234] sm:$0xf0]  ;;  %v2672_v23 = vld [vmem:[#allocation4 + $0x2b0] sm:$0xf] }
  0xc2   : > { %852 = vmatmul.bf16.gmra.mxu0 %v2273_v10  ;;  %875 = vmatmul.bf16.gmra.mxu1 %v2277_v11  ;;  %v2633_v49 = vor.u32 %v2952_v26, %v2632_v25  ;;  %v625_v58 = vpack.c.b16 %v619_v39, %v619_v39  ;;  %v626_v59 = vpack.c.b16 %v620_v41, %v620_v41  ;;  %v987_v6 = vshll.u32 %v3312_v0, 16  ;;  %v2964_v10 = vld [vmem:[#allocation4 + $0x2c4] sm:$0xf0]  ;;  %v2949_v11 = vld [vmem:[#allocation4 + $0x254] sm:$0xf] }
  0xc3   : > { %v478_v16 = vmax.f32 %v442_v13, 0.0  ;;  %v479_v18 = vmax.f32 %v466_v15, 0.0  ;;  %1576 = vmatpush.bf16.msra.mxu3 %v2705_v47  ;;  %v2617_v8 = vor.u32 %v2948_v46, %v2616_v7  ;;  %v999_v13 = vshll.u32 %v3316_v4, 16  ;;  %v2626_v15 = vld [vmem:[#allocation4 + $0x258] sm:$0xf0] }
  0xc4   : > { %1554 = vmatpush.bf16.msra.mxu2 %v2633_v49  ;;  %v2681_v14 = vor.u32 %v2964_v10, %v2680_v9  ;;  %v2629_v17 = vor.u32 %v2949_v11, %v2626_v15  ;;  %v2609_v22 = vor.u32 %v2946_v20, %v2608_v19  ;;  %v2947_v47 = vld [vmem:[#allocation4 + $0x244] sm:$0xf]  ;;  %v2618_v26 = vld [vmem:[#allocation4 + $0x248] sm:$0xf0]  ;;  %v984_v33 = vrot.slane %v982_v5, 1 }
  0xc5   : > { %v535_v21 = vsel %vm506_vm2, %v478_v16, 0.0  ;;  %v536_v24 = vsel %vm506_vm2, %v479_v18, 0.0  ;;  %v2965_v16 = vld [vmem:[#allocation4 + $0x2d4] sm:$0xf]  ;;  %v2690_v18 = vld [vmem:[#allocation4 + $0x2d8] sm:$0xf0]  ;;  %v2621_v28 = vor.u32 %v2947_v47, %v2618_v26 }
  0xc6   : > { %v542_v27 = vpack.c.bf16 %v536_v24, %v535_v21  ;;  %v2693_v21 = vor.u32 %v2965_v16, %v2690_v18  ;;  %v2962_v24 = vld [vmem:[#allocation4 + $0x2b4] sm:$0xf0]  ;;  %1601 = vmatpush.bf16.msrb.mxu0 %v2629_v17  ;;  %v2682_v49 = vld [vmem:[#allocation4 + $0x2c8] sm:$0xf0]  ;;  %v2424_v35 = vld [vmem:[#allocation2 + $0x20] sm:$0xf]  ;;  %v985_v52 = vor.u32 %v984_v33, %v980_v43 }
  0xc7   : > { %1577 = vmatpush.bf16.msra.mxu3 %v2697_v31  ;;  %v2673_v25 = vor.u32 %v2962_v24, %v2672_v23  ;;  %v2944_v31 = vld [vmem:[#allocation4 + $0x224] sm:$0xf0]  ;;  %v2899_v39 = vld [vmem:[#allocation2 + $0x24] sm:$0xf]  ;;  %v3323_v44 = vrot.slane %v987_v6, 1  ;;  %v3326_v48 = vrot.slane %v999_v13, 1 }
  0xc8   : > { %548 = vst [vmem:[#allocation2 + $0x28] sm:$0x11] %v542_v27  ;;  %1555 = vmatpush.bf16.msra.mxu2 %v2625_v45  ;;  %v2963_v27 = vld [vmem:[#allocation4 + $0x2c4] sm:$0xf]  ;;  %1624 = vmatpush.bf16.msrb.mxu1 %v2693_v21  ;;  %v2601_v36 = vor.u32 %v2944_v31, %v2600_v30  ;;  %v992_v45 = vshrl.u32 %v3314_v3, 16  ;;  %v1003_v47 = vshrl.u32 %v3312_v0, 16 }
  0xc9   : > { %v2685_v29 = vor.u32 %v2963_v27, %v2682_v49  ;;  %v2961_v60 = vld [vmem:[#allocation4 + $0x2b4] sm:$0xf]  ;;  %v2674_v62 = vld [vmem:[#allocation4 + $0x2b8] sm:$0xf0]  ;;  %v2592_v63 = vld [vmem:[#allocation4 + $0x210] sm:$0xf] }
  0xca   : > { %1602 = vmatpush.bf16.msrb.mxu0 %v2621_v28  ;;  %v997_v53 = vor.u32 %v996_v34, %v992_v45  ;;  %v2677_v2 = vor.u32 %v2961_v60, %v2674_v62  ;;  %v2593_v3 = vor.u32 %v2942_v1, %v2592_v63  ;;  %v2656_v5 = vld [vmem:[#allocation4 + $0x290] sm:$0xf]  ;;  %v2958_v6 = vld [vmem:[#allocation4 + $0x294] sm:$0xf0]  ;;  %v2943_v7 = vld [vmem:[#allocation4 + $0x224] sm:$0xf]  ;;  %v1005_v31 = vor.u32 %v1003_v47, %v3323_v44 }
  0xcb   : > { %1578 = vmatpush.bf16.msra.mxu3 %v2689_v54  ;;  %v990_v54 = vsel %vm978_vm3, %v985_v52, %v3323_v44  ;;  %v2657_v46 = vor.u32 %v2958_v6, %v2656_v5  ;;  %v2959_v9 = vld [vmem:[#allocation4 + $0x2a4] sm:$0xf]  ;;  %v2666_v10 = vld [vmem:[#allocation4 + $0x2a8] sm:$0xf0]  ;;  %v2941_v13 = vld [vmem:[#allocation4 + $0x214] sm:$0xf] }
  0xcc   : > { %1556 = vmatpush.bf16.msra.mxu2 %v2617_v8  ;;  %1625 = vmatpush.bf16.msrb.mxu1 %v2685_v29  ;;  %v1002_v55 = vsel %vm978_vm3, %v997_v53, %v3326_v48  ;;  %v2602_v8 = vld [vmem:[#allocation4 + $0x228] sm:$0xf0]  ;;  %v2669_v12 = vor.u32 %v2959_v9, %v2666_v10  ;;  %v2957_v15 = vld [vmem:[#allocation4 + $0x294] sm:$0xf]  ;;  %v2658_v16 = vld [vmem:[#allocation4 + $0x298] sm:$0xf0] }
  0xcd   : > { %v2605_v11 = vor.u32 %v2943_v7, %v2602_v8  ;;  %v2584_v17 = vld [vmem:[#allocation4 + $0x200] sm:$0xf]  ;;  %v2940_v18 = vld [vmem:[#allocation4 + $0x204] sm:$0xf0]  ;;  %v2661_v24 = vor.u32 %v2957_v15, %v2658_v16  ;;  %v1011_v26 = vshrl.u32 %v3316_v4, 16 }
  0xce   : > { %v2585_v19 = vor.u32 %v2940_v18, %v2584_v17  ;;  %v2648_v20 = vld [vmem:[#allocation4 + $0x280] sm:$0xf]  ;;  %v2956_v21 = vld [vmem:[#allocation4 + $0x284] sm:$0xf0]  ;;  %v2939_v49 = vld [vmem:[#allocation4 + $0x204] sm:$0xf] }
  0xcf   : > { %1579 = vmatpush.bf16.msra.mxu3 %v2681_v14  ;;  %v2900_v38 = vld [vmem:[#allocation2 + $0x24] sm:$0x10]  ;;  %v2426_v41 = vld [vmem:[#allocation2 + $0x28] sm:$0x10]  ;;  %v2649_v23 = vor.u32 %v2956_v21, %v2648_v20  ;;  %v2586_v28 = vld [vmem:[#allocation4 + $0x208] sm:$0xf0]  ;;  %v1013_v32 = vor.u32 %v1011_v26, %v3326_v48 }
  0xd0   : > { %1557 = vmatpush.bf16.msra.mxu2 %v2609_v22  ;;  %v3328_v50 = vor.u32 %v2900_v38, %v2424_v35  ;;  %v3330_v51 = vor.u32 %v2899_v39, %v2426_v41  ;;  %1626 = vmatpush.bf16.msrb.mxu1 %v2677_v2  ;;  %v2594_v14 = vld [vmem:[#allocation4 + $0x218] sm:$0xf0]  ;;  %v2955_v29 = vld [vmem:[#allocation4 + $0x284] sm:$0xf]  ;;  %v2650_v30 = vld [vmem:[#allocation4 + $0x288] sm:$0xf0]  ;;  %v2589_v33 = vor.u32 %v2939_v49, %v2586_v28 }
  0xd1   : > { %811 = vmatmul.bf16.gmra.mxu2 %v625_v58  ;;  %834 = vmatmul.bf16.gmra.mxu3 %v626_v59  ;;  %v2597_v22 = vor.u32 %v2941_v13, %v2594_v14  ;;  %v2653_v34 = vor.u32 %v2955_v29, %v2650_v30  ;;  %v2936_v39 = vld [vmem:[#allocation2 + $0x14] sm:$0xf0]  ;;  %v2570_v41 = vld [vmem:[#allocation2 + $0x18] sm:$0xf0]  ;;  %v2568_v43 = vld [vmem:[#allocation2 + $0x10] sm:$0xf] }
  0xd2   : > { %857 = vmatmul.bf16.gmra.mxu0 %v625_v58  ;;  %880 = vmatmul.bf16.gmra.mxu1 %v626_v59  ;;  %v1007_v56 = vshll.u32 %v3328_v50, 16  ;;  %v1015_v57 = vshll.u32 %v3330_v51, 16  ;;  %v2945_v58 = vld [vmem:[#allocation4 + $0x234] sm:$0xf]  ;;  %v2610_v59 = vld [vmem:[#allocation4 + $0x238] sm:$0xf0]  ;;  %v2569_v48 = vor.u32 %v2936_v39, %v2568_v43 }
  0xd3   : > { %1580 = vmatpush.bf16.msra.mxu3 %v2673_v25  ;;  %v2613_v61 = vor.u32 %v2945_v58, %v2610_v59  ;;  %v1019_v4 = vshrl.u32 %v3328_v50, 16  ;;  %v2562_v44 = vld [vmem:[#allocation2 + $0x8] sm:$0xf0]  ;;  %v2935_v45 = vld [vmem:[#allocation2 + $0x14] sm:$0xf] }
  0xd4   : > { %1558 = vmatpush.bf16.msra.mxu2 %v2601_v36  ;;  %1627 = vmatpush.bf16.msrb.mxu1 %v2669_v12  ;;  %v1009_v25 = vrot.slane %v1007_v56, 1  ;;  %v1017_v27 = vrot.slane %v1015_v57, 1  ;;  %v1022_v36 = vshrl.u32 %v3330_v51, 16  ;;  %v2573_v52 = vor.u32 %v2935_v45, %v2570_v41  ;;  %v2560_v53 = vld [vmem:[#allocation2] sm:$0xe] }
  0xd5   : > { %1603 = vmatpush.bf16.msrb.mxu0 %v2613_v61  ;;  %v1378_v56 = vrot.slane %v2569_v48, 1  ;;  %v2576_v61 = vld [vmem:[#allocation2 + $0x20] sm:$0xf]  ;;  %v2938_v62 = vld [vmem:[#allocation2 + $0x24] sm:$0x10] }
  0xd6   : > { %v1010_v35 = vsel %vm978_vm3, %v1005_v31, %v1009_v25  ;;  %v1018_v0 = vsel %vm978_vm3, %v1013_v32, %v1017_v27  ;;  %v1021_v37 = vor.u32 %v1019_v4, %v1009_v25  ;;  %v1024_v38 = vor.u32 %v1022_v36, %v1017_v27  ;;  %v2937_v63 = vld [vmem:[#allocation2 + $0x24] sm:$0xf]  ;;  %v2578_v1 = vld [vmem:[#allocation2 + $0x28] sm:$0x10]  ;;  %v2712_v8 = vld [vmem:[%s3533_s6] sm:$0xf] }
  0xd7   : > { %1581 = vmatpush.bf16.msra.mxu3 %v2665_v42  ;;  %v2934_v42 = vld [vmem:[#allocation2 + $0x4] sm:$0xf0]  ;;  %v1381_v51 = vrot.slane %v2573_v52, 1  ;;  %v2577_v2 = vor.u32 %v2938_v62, %v2576_v61  ;;  %v3003_v10 = vld [vmem:[%s3533_s6 + $0x4] sm:$0xf] }
  0xd8   : > { %1559 = vmatpush.bf16.msra.mxu2 %v2593_v3  ;;  %1628 = vmatpush.bf16.msrb.mxu1 %v2661_v24  ;;  %v2581_v3 = vor.u32 %v2937_v63, %v2578_v1  ;;  %v3004_v9 = vld [vmem:[%s3533_s6 + $0x4] sm:$0xf0]  ;;  %v2714_v12 = vld [vmem:[%s3533_s6 + $0x8] sm:$0xf0]  ;;  %v3054_v4 = vld [vmem:[%s3254_s30] sm:$0xff] }
  0xd9   : > { %1604 = vmatpush.bf16.msrb.mxu0 %v2605_v11  ;;  %v1383_v5 = vrot.slane %v2577_v2, 1  ;;  %v2713_v11 = vor.u32 %v3004_v9, %v2712_v8  ;;  %v2717_v13 = vor.u32 %v3003_v10, %v2714_v12  ;;  %v1741_v36 = vshrl.u32 %v3054_v4, 16  ;;  %v2782_v63 = vld [vmem:[#allocation6 + $0x70] sm:$0xf]  ;;  %v2986_v1 = vld [vmem:[#allocation6 + $0x74] sm:$0xf0] }
  0xda   : > { %v1385_v6 = vrot.slane %v2581_v3, 1  ;;  %v2983_v2 = vld [vmem:[#allocation6 + $0x64] sm:$0xf]  ;;  %v2783_v3 = vor.u32 %v2986_v1, %v2782_v63  ;;  %v2846_v8 = vld [vmem:[#allocation6 + $0xf0] sm:$0xf] }
  0xdb   : > { %1582 = vmatpush.bf16.msra.mxu3 %v2657_v46  ;;  %v1384_v7 = vsel %vm1376_vm4, %v1378_v56, %v1383_v5  ;;  %v3002_v9 = vld [vmem:[#allocation6 + $0xf4] sm:$0xf0]  ;;  %v2840_v12 = vld [vmem:[#allocation6 + $0xe8] sm:$0xf0] }
  0xdc   : > { %1560 = vmatpush.bf16.msra.mxu2 %v2585_v19  ;;  %1629 = vmatpush.bf16.msrb.mxu1 %v2653_v34  ;;  %v1386_v46 = vsel %vm1376_vm4, %v1381_v51, %v1385_v6  ;;  %v2847_v10 = vor.u32 %v3002_v9, %v2846_v8  ;;  %v2758_v8 = vld [vmem:[#allocation6 + $0x40] sm:$0xf]  ;;  %v2980_v9 = vld [vmem:[#allocation6 + $0x44] sm:$0xf0] }
  0xdd   : > { %1605 = vmatpush.bf16.msrb.mxu0 %v2597_v22 }
  0xdf   : > { %1583 = vmatpush.bf16.msra.mxu3 %v2649_v23 }
  0xe1   : > { %1199 = vmatmul.bf16.vlgmr.msrb.gmra.mxu2 %v990_v54  ;;  %1222 = vmatmul.bf16.vlgmr.msrb.gmra.mxu3 %v1002_v55 }
  0xe2   : > { %1245 = vmatmul.bf16.vlgmr.msra.gmra.mxu0 %v990_v54  ;;  %1268 = vmatmul.bf16.vlgmr.msra.gmra.mxu1 %v1002_v55  ;;  %v2933_v54 = vld [vmem:[#allocation2 + $0x4] sm:$0xe]  ;;  %v2561_v55 = vor.u32 %v2934_v42, %v2560_v53 }
  0xe3   : > { %1606 = vmatpush.bf16.msrb.mxu0 %v2589_v33  ;;  %v2565_v50 = vor.u32 %v2933_v54, %v2562_v44  ;;  %1787 = vmatpush.bf16.msrb.mxu2 %v2713_v11  ;;  %v2999_v11 = vld [vmem:[#allocation6 + $0xe4] sm:$0xf] }
  0xe4   : > { %v1377_v57 = vrot.slane %v2561_v55, 1  ;;  %1810 = vmatpush.bf16.msrb.mxu3 %v2717_v13  ;;  %v2985_v55 = vld [vmem:[#allocation6 + $0x74] sm:$0xf]  ;;  %v2774_v13 = vld [vmem:[#allocation6 + $0x60] sm:$0xf]  ;;  %2009 = vmatpush.bf16.msra.mxu1 %v2847_v10 }
  0xe5   : > { %v1380_v58 = vrot.slane %v2565_v50, 1  ;;  %v2784_v50 = vld [vmem:[#allocation6 + $0x78] sm:$0xf0]  ;;  %v2977_v10 = vld [vmem:[#allocation6 + $0x34] sm:$0xf] }
  0xe6   : > { %v1379_v59 = vsel %vm1376_vm4, %v1377_v57, %v1378_v56  ;;  %v3001_v56 = vld [vmem:[#allocation6 + $0xf4] sm:$0xf]  ;;  %v2848_v57 = vld [vmem:[#allocation6 + $0xf8] sm:$0xf0] }
  0xe7   : > { %v1382_v60 = vsel %vm1376_vm4, %v1380_v58, %v1381_v51  ;;  %v2787_v51 = vor.u32 %v2985_v55, %v2784_v50  ;;  %1986 = vmatpush.bf16.msra.mxu0 %v2783_v3  ;;  %v2995_v55 = vld [vmem:[#allocation6 + $0xc4] sm:$0xf]  ;;  %v2824_v50 = vld [vmem:[#allocation6 + $0xc8] sm:$0xf0]  ;;  %v2996_v3 = vld [vmem:[#allocation6 + $0xc4] sm:$0xf0] }
  0xf1   : > { %1204 = vmatmul.bf16.gmra.mxu2 %v1010_v35  ;;  %1227 = vmatmul.bf16.gmra.mxu3 %v1018_v0 }
  0xf2   : > { %1250 = vmatmul.bf16.gmra.mxu0 %v1010_v35  ;;  %1273 = vmatmul.bf16.gmra.mxu1 %v1018_v0 }
 0x101   : > { %1209 = vmatmul.bf16.gmra.mxu2 %v1021_v37  ;;  %1232 = vmatmul.bf16.gmra.mxu3 %v1024_v38 }
 0x102   : > { %1255 = vmatmul.bf16.gmra.mxu0 %v1021_v37  ;;  %1278 = vmatmul.bf16.gmra.mxu1 %v1024_v38  ;;  %v1743_v37 = vshll.u32 %v3054_v4, 16  ;;  %v3055_v38 = vld [vmem:[%s3254_s30 + $0x8] sm:$0xff]  ;;  %v3000_v4 = vld [vmem:[#allocation6 + $0xe4] sm:$0xf0] }
 0x103   : > { %v1747_v39 = vshll.u32 %v3055_v38, 16 }
 0x104   : > { %v1745_v43 = vrot.slane %v1743_v37, 1 }
 0x105   : > { %v1749_v44 = vrot.slane %v1747_v39, 1  ;;  %v2766_v39 = vld [vmem:[#allocation6 + $0x50] sm:$0xf] }
 0x106   : > { %v1746_v48 = vor.u32 %v1745_v43, %v1741_v36  ;;  %v2997_v36 = vld [vmem:[#allocation6 + $0xd4] sm:$0xf] }
 0x108   : > { %v1750_v54 = vsel %vm978_vm3, %v1746_v48, %v1749_v44  ;;  %v2760_v48 = vld [vmem:[#allocation6 + $0x48] sm:$0xf0] }
 0x111   : > { %1561 = vmatmul.bf16.vlgmr.msra.gmra.mxu2 %v1379_v59  ;;  %1584 = vmatmul.bf16.vlgmr.msra.gmra.mxu3 %v1382_v60 }
 0x112   : > { %1607 = vmatmul.bf16.vlgmr.msrb.gmra.mxu0 %v1379_v59  ;;  %1630 = vmatmul.bf16.vlgmr.msrb.gmra.mxu1 %v1382_v60  ;;  %v2851_v60 = vor.u32 %v3001_v56, %v2848_v57 }
 0x113   : > { %2032 = vmatpush.bf16.msra.mxu2 %v2787_v51  ;;  %v2827_v51 = vor.u32 %v2995_v55, %v2824_v50  ;;  %v2989_v50 = vld [vmem:[#allocation6 + $0x94] sm:$0xf] }
 0x114   : > { %2055 = vmatpush.bf16.msra.mxu3 %v2851_v60 }
 0x121   : > { %1566 = vmatmul.bf16.gmra.mxu2 %v1384_v7  ;;  %1589 = vmatmul.bf16.gmra.mxu3 %v1386_v46 }
 0x122   : > { %1612 = vmatmul.bf16.gmra.mxu0 %v1384_v7  ;;  %1635 = vmatmul.bf16.gmra.mxu1 %v1386_v46  ;;  %v1751_v7 = vshrl.u32 %v3055_v38, 16  ;;  %v1754_v46 = vshll.u32 %v3276_v40, 16  ;;  %v2832_v38 = vld [vmem:[#allocation6 + $0xd8] sm:$0xf0] }
 0x12f   : > { %v848_v14 = vpop.f32.mrf.mxu0  ;;  %v871_v15 = vpop.f32.mrf.mxu1 }
 0x130   : > { %v3362_v16 = vadd.f32 %v871_v15, %v848_v14 }
 0x131   : > { %1571 = vmatmul.bf16.gmra.mxu2 %v1383_v5  ;;  %1594 = vmatmul.bf16.gmra.mxu3 %v1385_v6 }
 0x132   : > { %1617 = vmatmul.bf16.gmra.mxu0 %v1383_v5  ;;  %1640 = vmatmul.bf16.gmra.mxu1 %v1385_v6  ;;  %v2776_v5 = vld [vmem:[#allocation6 + $0x68] sm:$0xf0] }
 0x133   : > { %v2779_v6 = vor.u32 %v2983_v2, %v2776_v5  ;;  %v2822_v2 = vld [vmem:[#allocation6 + $0xc0] sm:$0xf]  ;;  %v1758_v5 = vshrl.u32 %v3276_v40, 16 }
 0x134   : > { %v802_v17 = vpop.f32.mrf.mxu2  ;;  %v825_v18 = vpop.f32.mrf.mxu3 }
 0x135   : > { %v3364_v19 = vadd.f32 %v825_v18, %v802_v17  ;;  %2033 = vmatpush.bf16.msra.mxu2 %v2779_v6  ;;  %v1753_v17 = vor.u32 %v1751_v7, %v1749_v44  ;;  %v1756_v18 = vrot.slane %v1754_v46, 1  ;;  %v2979_v44 = vld [vmem:[#allocation6 + $0x44] sm:$0xf]  ;;  %v2823_v46 = vor.u32 %v2996_v3, %v2822_v2  ;;  %v2976_v3 = vld [vmem:[#allocation6 + $0x24] sm:$0xf0] }
 0x137   : > { %v850_v20 = vpop.f32.mrf.mxu0  ;;  %v873_v21 = vpop.f32.mrf.mxu1 }
 0x138   : > { %v3366_v22 = vadd.f32 %v873_v21, %v850_v20  ;;  %v2843_v20 = vor.u32 %v2999_v11, %v2840_v12  ;;  %v2984_v21 = vld [vmem:[#allocation6 + $0x64] sm:$0xf0]  ;;  %v1760_v11 = vor.u32 %v1758_v5, %v1756_v18  ;;  %v2759_v12 = vor.u32 %v2980_v9, %v2758_v8  ;;  %v2973_v5 = vld [vmem:[#allocation6 + $0x14] sm:$0xf] }
 0x13a   : > { %2056 = vmatpush.bf16.msra.mxu3 %v2843_v20  ;;  %v2816_v20 = vld [vmem:[#allocation6 + $0xb8] sm:$0xf0] }
 0x13c   : > { %v3368_v23 = vpop.f32.mrf.mxu2  ;;  %v3370_v24 = vpop.f32.mrf.mxu3 }
 0x13f   : > { %v853_v47 = vpop.f32.mrf.mxu0  ;;  %v876_v25 = vpop.f32.mrf.mxu1 }
 0x140   : > { %v3372_v26 = vadd.f32 %v876_v25, %v853_v47  ;;  %v2981_v47 = vld [vmem:[#allocation6 + $0x54] sm:$0xf]  ;;  %v2775_v25 = vor.u32 %v2984_v21, %v2774_v13  ;;  %v2752_v13 = vld [vmem:[#allocation6 + $0x38] sm:$0xf0] }
 0x141   : > { %2718 = vmatmul.msk.bf16.vlgmr.msrb.gmra.mxu2 %vm410_vm0, %v1750_v54  ;;  %2721 = vmatmul.msk.bf16.vlgmr.msrb.gmra.mxu3 %vm410_vm0, %v1750_v54  ;;  %v2998_v54 = vld [vmem:[#allocation6 + $0xd4] sm:$0xf0]  ;;  %v2755_v21 = vor.u32 %v2977_v10, %v2752_v13  ;;  %v2790_v13 = vld [vmem:[#allocation6 + $0x80] sm:$0xf] }
 0x142   : > { %1987 = vmatpush.bf16.msra.mxu0 %v2775_v25  ;;  %v2814_v25 = vld [vmem:[#allocation6 + $0xb0] sm:$0xf] }
 0x144   : > { %v807_v27 = vpop.f32.mrf.mxu2  ;;  %v830_v49 = vpop.f32.mrf.mxu3 }
 0x145   : > { %v3374_v28 = vadd.f32 %v830_v49, %v807_v27  ;;  %v2768_v27 = vld [vmem:[#allocation6 + $0x58] sm:$0xf0]  ;;  %v1757_v49 = vsel %vm978_vm3, %v1753_v17, %v1756_v18  ;;  %v2993_v17 = vld [vmem:[#allocation6 + $0xb4] sm:$0xf] }
 0x147   : > { %v855_v29 = vpop.f32.mrf.mxu0  ;;  %v878_v30 = vpop.f32.mrf.mxu1 }
 0x148   : > { %v3376_v31 = vadd.f32 %v878_v30, %v855_v29  ;;  %v2771_v29 = vor.u32 %v2981_v47, %v2768_v27  ;;  %v2819_v47 = vor.u32 %v2993_v17, %v2816_v20  ;;  %v2994_v27 = vld [vmem:[#allocation6 + $0xb4] sm:$0xf0]  ;;  %v2988_v17 = vld [vmem:[#allocation6 + $0x84] sm:$0xf0]  ;;  %v2987_v20 = vld [vmem:[#allocation6 + $0x84] sm:$0xf] }
 0x149   : > { %v2815_v40 = vor.u32 %v2994_v27, %v2814_v25  ;;  %v2791_v25 = vor.u32 %v2988_v17, %v2790_v13  ;;  %v2792_v27 = vld [vmem:[#allocation6 + $0x88] sm:$0xf0] }
 0x14a   : > { %2034 = vmatpush.bf16.msra.mxu2 %v2771_v29  ;;  %v2978_v29 = vld [vmem:[#allocation6 + $0x34] sm:$0xf0] }
 0x14c   : > { %v3378_v32 = vpop.f32.mrf.mxu2  ;;  %v3380_v33 = vpop.f32.mrf.mxu3 }
 0x14f   : > { %v858_v34 = vpop.f32.mrf.mxu0  ;;  %v881_v35 = vpop.f32.mrf.mxu1 }
 0x150   : > { %v3382_v0 = vadd.f32 %v881_v35, %v858_v34  ;;  %v2838_v35 = vld [vmem:[#allocation6 + $0xe0] sm:$0xf] }
 0x151   : > { %v2839_v37 = vor.u32 %v3000_v4, %v2838_v35  ;;  %2719 = vmatmul.msk.bf16.gmra.mxu2 %vm410_vm0, %v1757_v49  ;;  %2722 = vmatmul.msk.bf16.gmra.mxu3 %vm410_vm0, %v1757_v49  ;;  %v2750_v49 = vld [vmem:[#allocation6 + $0x30] sm:$0xf]  ;;  %v2975_v35 = vld [vmem:[#allocation6 + $0x24] sm:$0xf] }
 0x153   : > { %2010 = vmatpush.bf16.msra.mxu1 %v2839_v37  ;;  %v2744_v37 = vld [vmem:[#allocation6 + $0x28] sm:$0xf0] }
 0x154   : > { %v812_v41 = vpop.f32.mrf.mxu2  ;;  %v835_v42 = vpop.f32.mrf.mxu3 }
 0x155   : > { %v3386_v45 = vadd.f32 %v835_v42, %v812_v41  ;;  %v2982_v41 = vld [vmem:[#allocation6 + $0x54] sm:$0xf0]  ;;  %v2835_v42 = vor.u32 %v2997_v36, %v2832_v38  ;;  %v2751_v36 = vor.u32 %v2978_v29, %v2750_v49  ;;  %v2747_v38 = vor.u32 %v2975_v35, %v2744_v37  ;;  %v2728_v37 = vld [vmem:[#allocation6 + $0x8] sm:$0xf0] }
 0x156   : > { %v2767_v43 = vor.u32 %v2982_v41, %v2766_v39  ;;  %v2974_v49 = vld [vmem:[#allocation6 + $0x14] sm:$0xf0]  ;;  %v2795_v29 = vor.u32 %v2987_v20, %v2792_v27 }
 0x157   : > { %v860_v52 = vpop.f32.mrf.mxu0  ;;  %v883_v53 = vpop.f32.mrf.mxu1  ;;  %2057 = vmatpush.bf16.msra.mxu3 %v2835_v42  ;;  %v2806_v42 = vld [vmem:[#allocation6 + $0xa0] sm:$0xf] }
 0x158   : > { %v2830_v52 = vld [vmem:[#allocation6 + $0xd0] sm:$0xf]  ;;  %v2763_v53 = vor.u32 %v2979_v44, %v2760_v48  ;;  %1988 = vmatpush.bf16.msra.mxu0 %v2767_v43  ;;  %v2992_v43 = vld [vmem:[#allocation6 + $0xa4] sm:$0xf0]  ;;  %v2991_v44 = vld [vmem:[#allocation6 + $0xa4] sm:$0xf] }
 0x159   : > { %v2831_v56 = vor.u32 %v2998_v54, %v2830_v52  ;;  %v2807_v48 = vor.u32 %v2992_v43, %v2806_v42  ;;  %v2808_v52 = vld [vmem:[#allocation6 + $0xa8] sm:$0xf0]  ;;  %v2990_v54 = vld [vmem:[#allocation6 + $0x94] sm:$0xf0]  ;;  %v2726_v42 = vld [vmem:[#allocation6] sm:$0xf] }
 0x15a   : > { %2035 = vmatpush.bf16.msra.mxu2 %v2763_v53  ;;  %v2798_v53 = vld [vmem:[#allocation6 + $0x90] sm:$0xf]  ;;  %v2811_v55 = vor.u32 %v2991_v44, %v2808_v52  ;;  %v2972_v43 = vld [vmem:[#allocation6 + $0x4] sm:$0xf0] }
 0x15b   : > { %2011 = vmatpush.bf16.msra.mxu1 %v2831_v56  ;;  %2058 = vmatpush.bf16.msra.mxu3 %v2827_v51  ;;  %v2800_v56 = vld [vmem:[#allocation6 + $0x98] sm:$0xf0]  ;;  %v2742_v51 = vld [vmem:[#allocation6 + $0x20] sm:$0xf]  ;;  %v2799_v2 = vor.u32 %v2990_v54, %v2798_v53  ;;  %v2727_v52 = vor.u32 %v2972_v43, %v2726_v42 }
 0x15c   : > { %v814_v58 = vpop.f32.mrf.mxu2  ;;  %v837_v59 = vpop.f32.mrf.mxu3  ;;  %1989 = vmatpush.bf16.msra.mxu0 %v2759_v12  ;;  %v2803_v10 = vor.u32 %v2989_v50, %v2800_v56  ;;  %v1675_v56 = vld [vmem:[%s3531_s4] sm:$0x3] }
 0x15e   : > { %2036 = vmatpush.bf16.msra.mxu2 %v2755_v21 }
 0x15f   : > { %v3391_v61 = vpop.f32.mrf.mxu0  ;;  %v3393_v62 = vpop.f32.mrf.mxu1  ;;  %2012 = vmatpush.bf16.msra.mxu1 %v2823_v46  ;;  %2059 = vmatpush.bf16.msra.mxu3 %v2819_v47  ;;  %v2736_v46 = vld [vmem:[#allocation6 + $0x18] sm:$0xf0] }
 0x160   : > { %1990 = vmatpush.bf16.msra.mxu0 %v2751_v36  ;;  %v2739_v12 = vor.u32 %v2973_v5, %v2736_v46  ;;  %v2971_v36 = vld [vmem:[#allocation6 + $0x4] sm:$0xf] }
 0x161   : > { %2720 = vmatmul.msk.bf16.gmra.mxu2 %vm410_vm0, %v1760_v11  ;;  %2723 = vmatmul.msk.bf16.gmra.mxu3 %vm410_vm0, %v1760_v11  ;;  %v2743_v11 = vor.u32 %v2976_v3, %v2742_v51 }
 0x162   : > { %2037 = vmatpush.bf16.msra.mxu2 %v2747_v38  ;;  %v2731_v38 = vor.u32 %v2971_v36, %v2728_v37 }
 0x163   : > { %2013 = vmatpush.bf16.msra.mxu1 %v2815_v40  ;;  %2060 = vmatpush.bf16.msra.mxu3 %v2811_v55  ;;  %v2734_v40 = vld [vmem:[#allocation6 + $0x10] sm:$0xf]  ;;  %v1270_v55 = vadd.f32 %v3393_v62, %v3391_v61 }
 0x164   : > { %v3396_v14 = vpop.f32.mrf.mxu2  ;;  %v3398_v15 = vpop.f32.mrf.mxu3  ;;  %1991 = vmatpush.bf16.msra.mxu0 %v2743_v11  ;;  %v2735_v35 = vor.u32 %v2974_v49, %v2734_v40  ;;  %v3448_v11 = vperm.slane %v1675_v56, 1 }
 0x165   : > { %v1284_v51 = vadd.f32 %v1270_v55, %v3362_v16  ;;  %v1224_v46 = vadd.f32 %v3398_v15, %v3396_v14  ;;  %v828_v14 = vadd.f32 %v3370_v24, %v3368_v23 }
 0x166   : > { %2038 = vmatpush.bf16.msra.mxu2 %v2739_v12 }
 0x167   : > { %v3401_v30 = vpop.f32.mrf.mxu0  ;;  %v3403_v34 = vpop.f32.mrf.mxu1  ;;  %2014 = vmatpush.bf16.msra.mxu1 %v2807_v48  ;;  %2061 = vmatpush.bf16.msra.mxu3 %v2803_v10  ;;  %v1283_v20 = vadd.f32 %v1224_v46, %v3364_v19 }
 0x168   : > { %1992 = vmatpush.bf16.msra.mxu0 %v2735_v35 }
 0x16a   : > { %2039 = vmatpush.bf16.msra.mxu2 %v2731_v38 }
 0x16b   : > { %2015 = vmatpush.bf16.msra.mxu1 %v2799_v2  ;;  %2062 = vmatpush.bf16.msra.mxu3 %v2795_v29  ;;  %v1272_v2 = vadd.f32 %v3403_v34, %v3401_v30 }
 0x16c   : > { %v3407_v57 = vpop.f32.mrf.mxu2  ;;  %v3409_v58 = vpop.f32.mrf.mxu3  ;;  %1993 = vmatpush.bf16.msra.mxu0 %v2727_v52 }
 0x16d   : > { %v1286_v13 = vadd.f32 %v1272_v2, %v3366_v22  ;;  %v1226_v16 = vadd.f32 %v3409_v58, %v3407_v57 }
 0x16f   : > { %v3411_v59 = vpop.f32.mrf.mxu0  ;;  %v3413_v60 = vpop.f32.mrf.mxu1  ;;  %2016 = vmatpush.bf16.msra.mxu1 %v2791_v25  ;;  %v1285_v22 = vadd.f32 %v1226_v16, %v828_v14 }
 0x170   : > { %v1275_v36 = vadd.f32 %v3413_v60, %v3411_v59 }
 0x172   : > { %v1288_v43 = vadd.f32 %v1275_v36, %v3372_v26 }
 0x174   : > { %v3415_v63 = vpop.f32.mrf.mxu2  ;;  %v3417_v1 = vpop.f32.mrf.mxu3 }
 0x177   : > { %v3420_v6 = vpop.f32.mrf.mxu0  ;;  %v3422_v7 = vpop.f32.mrf.mxu1 }
 0x17c   : > { %v3426_v18 = vpop.f32.mrf.mxu2  ;;  %v3428_v4 = vpop.f32.mrf.mxu3 }
 0x17f   : > { %v3430_v39 = vpop.f32.mrf.mxu0  ;;  %v3432_v41 = vpop.f32.mrf.mxu1 }
 0x184   : > { %v3434_v8 = vpop.f32.mrf.mxu2  ;;  %v3436_v9 = vpop.f32.mrf.mxu3 }
 0x185   : > { %v1234_v16 = vadd.f32 %v3436_v9, %v3434_v8 }
 0x187   : > { %v1258_v21 = vpop.f32.mrf.mxu0  ;;  %v1281_v47 = vpop.f32.mrf.mxu1 }
 0x188   : > { %v3457_v21 = vperm.slane %v1675_v56, 0 }
 0x18c   : > { %v1212_v44 = vpop.f32.mrf.mxu2  ;;  %v1235_v48 = vpop.f32.mrf.mxu3 }
 0x18d   : > { %v1277_v44 = vadd.f32 %v3422_v7, %v3420_v6  ;;  %v1231_v6 = vadd.f32 %v3428_v4, %v3426_v18 }
 0x18f   : > { %v1608_v53 = vpop.f32.mrf.mxu0  ;;  %v1631_v54 = vpop.f32.mrf.mxu1  ;;  %v1290_v56 = vadd.f32 %v1277_v44, %v3376_v31  ;;  %v1280_v31 = vadd.f32 %v3432_v41, %v3430_v39 }
 0x190   : > { %v1632_v50 = vadd.f32 %v1631_v54, %v1608_v53  ;;  %v1229_v53 = vadd.f32 %v3417_v1, %v3415_v63  ;;  %v833_v63 = vadd.f32 %v3380_v33, %v3378_v32 }
 0x191   : > { %v1292_v33 = vadd.f32 %v1280_v31, %v3382_v0 }
 0x192   : > { %v1646_v10 = vadd.f32 %v1632_v50, %v1284_v51  ;;  %v1287_v26 = vadd.f32 %v1229_v53, %v3374_v28 }
 0x194   : > { %v1562_v3 = vpop.f32.mrf.mxu2  ;;  %v1585_v5 = vpop.f32.mrf.mxu3  ;;  %v1682_v30 = vadd.f32 %v3448_v11, %v1646_v10  ;;  %v1289_v10 = vadd.f32 %v1231_v6, %v833_v63 }
 0x195   : > { %v1586_v12 = vadd.f32 %v1585_v5, %v1562_v3 }
 0x196   : > { %v1692_v49 = vmax.f32 %v1682_v30, 0.0 }
 0x197   : > { %v1610_v61 = vpop.f32.mrf.mxu0  ;;  %v1633_v62 = vpop.f32.mrf.mxu1  ;;  %v1645_v15 = vadd.f32 %v1586_v12, %v1283_v20 }
 0x198   : > { %v1634_v17 = vadd.f32 %v1633_v62, %v1610_v61 }
 0x199   : > { %v1681_v29 = vadd.f32 %v3457_v21, %v1645_v15 }
 0x19a   : > { %v1648_v34 = vadd.f32 %v1634_v17, %v1286_v13 }
 0x19b   : > { %v1691_v38 = vmax.f32 %v1681_v29, 0.0 }
 0x19c   : > { %v1684_v47 = vadd.f32 %v3448_v11, %v1648_v34  ;;  %v1564_v25 = vpop.f32.mrf.mxu2  ;;  %v1587_v27 = vpop.f32.mrf.mxu3 }
 0x19d   : > { %v1588_v40 = vadd.f32 %v1587_v27, %v1564_v25  ;;  %v1291_v25 = vadd.f32 %v1234_v16, %v3386_v45 }
 0x19e   : > { %v1694_v19 = vmax.f32 %v1684_v47, 0.0 }
 0x19f   : > { %v1647_v57 = vadd.f32 %v1588_v40, %v1285_v22  ;;  %v1613_v58 = vpop.f32.mrf.mxu0  ;;  %v1636_v35 = vpop.f32.mrf.mxu1 }
 0x1a0   : > { %v1702_v23 = vpack.c.bf16 %v1694_v19, %v1692_v49  ;;  %v1637_v37 = vadd.f32 %v1636_v35, %v1613_v58 }
 0x1a1   : > { %v1683_v24 = vadd.f32 %v3457_v21, %v1647_v57 }
 0x1a2   : > { %2017 = vmatmul.bf16.vlgmr.msra.gmra.mxu1 %v1702_v23  ;;  %2063 = vmatmul.bf16.vlgmr.msra.gmra.mxu3 %v1702_v23  ;;  %v1650_v59 = vadd.f32 %v1637_v37, %v1288_v43 }
 0x1a3   : > { %v1693_v42 = vmax.f32 %v1683_v24, 0.0 }
 0x1a4   : > { %v1567_v48 = vpop.f32.mrf.mxu2  ;;  %v1590_v52 = vpop.f32.mrf.mxu3  ;;  %v1686_v7 = vadd.f32 %v3448_v11, %v1650_v59  ;;  %v2078_v59 = vld [vmem:[%s3534_s7] sm:$0x3] }
 0x1a5   : > { %v1701_v54 = vpack.c.bf16 %v1693_v42, %v1691_v38  ;;  %v1591_v60 = vadd.f32 %v1590_v52, %v1567_v48 }
 0x1a6   : > { %v1696_v28 = vmax.f32 %v1686_v7, 0.0 }
 0x1a7   : > { %v1615_v55 = vpop.f32.mrf.mxu0  ;;  %v1638_v50 = vpop.f32.mrf.mxu1  ;;  %1994 = vmatmul.bf16.vlgmr.msra.gmra.mxu0 %v1701_v54  ;;  %2040 = vmatmul.bf16.vlgmr.msra.gmra.mxu2 %v1701_v54  ;;  %v1649_v1 = vadd.f32 %v1591_v60, %v1287_v26  ;;  %v3494_v26 = vperm.slane %v2078_v59, 1 }
 0x1a8   : > { %v1639_v51 = vadd.f32 %v1638_v50, %v1615_v55  ;;  %v3492_v50 = vperm.slane %v2078_v59, 0 }
 0x1a9   : > { %v1685_v18 = vadd.f32 %v3457_v21, %v1649_v1 }
 0x1aa   : > { %v1652_v2 = vadd.f32 %v1639_v51, %v1290_v56 }
 0x1ab   : > { %v1695_v30 = vmax.f32 %v1685_v18, 0.0 }
 0x1ac   : > { %v1688_v3 = vadd.f32 %v3448_v11, %v1652_v2  ;;  %v1569_v5 = vpop.f32.mrf.mxu2  ;;  %v1592_v46 = vpop.f32.mrf.mxu3 }
 0x1ad   : > { %v1593_v12 = vadd.f32 %v1592_v46, %v1569_v5 }
 0x1ae   : > { %v1698_v61 = vmax.f32 %v1688_v3, 0.0 }
 0x1af   : > { %v1651_v4 = vadd.f32 %v1593_v12, %v1289_v10  ;;  %v1618_v62 = vpop.f32.mrf.mxu0  ;;  %v1641_v13 = vpop.f32.mrf.mxu1 }
 0x1b0   : > { %v1642_v17 = vadd.f32 %v1641_v13, %v1618_v62  ;;  %v1704_v20 = vpack.c.bf16 %v1698_v61, %v1696_v28 }
 0x1b1   : > { %v1687_v32 = vadd.f32 %v3457_v21, %v1651_v4 }
 0x1b2   : > { %2022 = vmatmul.bf16.gmra.mxu1 %v1704_v20  ;;  %2068 = vmatmul.bf16.gmra.mxu3 %v1704_v20  ;;  %v1654_v41 = vadd.f32 %v1642_v17, %v1292_v33 }
 0x1b3   : > { %v1697_v39 = vmax.f32 %v1687_v32, 0.0 }
 0x1b4   : > { %v1572_v34 = vpop.f32.mrf.mxu2  ;;  %v1595_v14 = vpop.f32.mrf.mxu3  ;;  %v1690_v0 = vadd.f32 %v3448_v11, %v1654_v41 }
 0x1b5   : > { %v1596_v15 = vadd.f32 %v1595_v14, %v1572_v34  ;;  %v1703_v47 = vpack.c.bf16 %v1697_v39, %v1695_v30 }
 0x1b6   : > { %v1700_v29 = vmax.f32 %v1690_v0, 0.0 }
 0x1b7   : > { %v1620_v27 = vpop.f32.mrf.mxu0  ;;  %v1643_v22 = vpop.f32.mrf.mxu1  ;;  %1999 = vmatmul.bf16.gmra.mxu0 %v1703_v47  ;;  %2045 = vmatmul.bf16.gmra.mxu2 %v1703_v47  ;;  %v1653_v40 = vadd.f32 %v1596_v15, %v1291_v25 }
 0x1b8   : > { %v1706_v9 = vpack.c.bf16 %v1700_v29, %v1700_v29 }
 0x1b9   : > { %v1689_v8 = vadd.f32 %v3457_v21, %v1653_v40 }
 0x1bb   : > { %v1699_v57 = vmax.f32 %v1689_v8, 0.0 }
 0x1bc   : > { %v1574_v49 = vpop.f32.mrf.mxu2  ;;  %v1597_v19 = vpop.f32.mrf.mxu3 }
 0x1bd   : > { %v1705_v58 = vpack.c.bf16 %v1699_v57, %v1699_v57 }
 0x1c2   : > { %2027 = vmatmul.bf16.gmra.mxu1 %v1706_v9  ;;  %2073 = vmatmul.bf16.gmra.mxu3 %v1706_v9 }
 0x1c4   : > { %v1789_v45 = vpop.f32.mrf.mxu2  ;;  %v1812_v35 = vpop.f32.mrf.mxu3 }
 0x1c7   : > { %2004 = vmatmul.bf16.gmra.mxu0 %v1705_v58  ;;  %2050 = vmatmul.bf16.gmra.mxu2 %v1705_v58 }
 0x1cc   : > { %v1791_v36 = vpop.f32.mrf.mxu2  ;;  %v1814_v23 = vpop.f32.mrf.mxu3 }
 0x1d4   : > { %v1794_v24 = vpop.f32.mrf.mxu2  ;;  %v1817_v37 = vpop.f32.mrf.mxu3 }
 0x1dc   : > { %v1796_v11 = vpop.f32.mrf.mxu2  ;;  %v1819_v38 = vpop.f32.mrf.mxu3 }
 0x1e4   : > { %v1799_v42 = vpop.f32.mrf.mxu2  ;;  %v3487_v43 = vpop.f32.mrf.mxu3 }
 0x1ec   : > { %v1801_v44 = vpop.f32.mrf.mxu2  ;;  %v1824_v21 = vpop.f32.mrf.mxu3 }
 0x21f   : > { %v2018_v48 = vpop.f32.mrf.mxu1 }
 0x224   : > { %v1995_v52 = vpop.f32.mrf.mxu0 }
 0x225   : > { %v1996_v53 = vadd.f32 %v1995_v52, %v1789_v45  ;;  %v2064_v54 = vpop.f32.mrf.mxu3 }
 0x227   : > { %v2020_v60 = vpop.f32.mrf.mxu1  ;;  %v2019_v55 = vadd.f32 %v2018_v48, %v1996_v53 }
 0x229   : > { %v2084_v7 = vadd.f32 %v3492_v50, %v2019_v55 }
 0x22a   : > { %v2041_v56 = vpop.f32.mrf.mxu2 }
 0x22b   : > { %v2042_v51 = vadd.f32 %v2041_v56, %v1812_v35  ;;  %v2094_v46 = vmax.f32 %v2084_v7, 0.0 }
 0x22c   : > { %v1997_v6 = vpop.f32.mrf.mxu0 }
 0x22d   : > { %v2065_v2 = vadd.f32 %v2064_v54, %v2042_v51  ;;  %v1998_v63 = vadd.f32 %v1997_v6, %v1791_v36  ;;  %v2066_v1 = vpop.f32.mrf.mxu3 }
 0x22f   : > { %v2085_v3 = vadd.f32 %v3494_v26, %v2065_v2  ;;  %v2023_v5 = vpop.f32.mrf.mxu1  ;;  %v2021_v12 = vadd.f32 %v2020_v60, %v1998_v63 }
 0x231   : > { %v2095_v10 = vmax.f32 %v2085_v3, 0.0  ;;  %v2086_v4 = vadd.f32 %v3492_v50, %v2021_v12 }
 0x232   : > { %v2043_v31 = vpop.f32.mrf.mxu2 }
 0x233   : > { %v2104_v28 = vpack.c.bf16 %v2095_v10, %v2094_v46  ;;  %v2044_v61 = vadd.f32 %v2043_v31, %v1814_v23  ;;  %v2096_v33 = vmax.f32 %v2086_v4, 0.0 }
 0x234   : > { %v2000_v18 = vpop.f32.mrf.mxu0 }
 0x235   : > { %2109 = vst [vmem:[%s3502_s17] sm:$0xff] %v2104_v28  ;;  %v2067_v62 = vadd.f32 %v2066_v1, %v2044_v61  ;;  %v2001_v13 = vadd.f32 %v2000_v18, %v1794_v24  ;;  %v2069_v17 = vpop.f32.mrf.mxu3 }
 0x237   : > { %v2087_v20 = vadd.f32 %v3494_v26, %v2067_v62  ;;  %v2025_v32 = vpop.f32.mrf.mxu1  ;;  %v2024_v30 = vadd.f32 %v2023_v5, %v2001_v13 }
 0x239   : > { %v2097_v16 = vmax.f32 %v2087_v20, 0.0  ;;  %v2088_v15 = vadd.f32 %v3492_v50, %v2024_v30 }
 0x23a   : > { %v2046_v39 = vpop.f32.mrf.mxu2 }
 0x23b   : > { %v2105_v41 = vpack.c.bf16 %v2097_v16, %v2096_v33  ;;  %v2047_v34 = vadd.f32 %v2046_v39, %v1817_v37  ;;  %v2098_v40 = vmax.f32 %v2088_v15, 0.0 }
 0x23c   : > { %v2002_v14 = vpop.f32.mrf.mxu0 }
 0x23d   : > { %2110 = vst [vmem:[%s3502_s17 + $0x8] sm:$0xff] %v2105_v41  ;;  %v2070_v47 = vadd.f32 %v2069_v17, %v2047_v34  ;;  %v2003_v25 = vadd.f32 %v2002_v14, %v1796_v11  ;;  %v2071_v27 = vpop.f32.mrf.mxu3 }
 0x23f   : > { %v2089_v22 = vadd.f32 %v3494_v26, %v2070_v47  ;;  %v2028_v0 = vpop.f32.mrf.mxu1  ;;  %v2026_v19 = vadd.f32 %v2025_v32, %v2003_v25 }
 0x241   : > { %v2099_v49 = vmax.f32 %v2089_v22, 0.0  ;;  %v2090_v58 = vadd.f32 %v3492_v50, %v2026_v19 }
 0x242   : > { %v2048_v29 = vpop.f32.mrf.mxu2 }
 0x243   : > { %v2106_v8 = vpack.c.bf16 %v2099_v49, %v2098_v40  ;;  %v2049_v9 = vadd.f32 %v2048_v29, %v1819_v38  ;;  %v2100_v37 = vmax.f32 %v2090_v58, 0.0 }
 0x244   : > { %v2005_v57 = vpop.f32.mrf.mxu0 }
 0x245   : > { %2111 = vst [vmem:[%s3502_s17 + $0x10] sm:$0xff] %v2106_v8  ;;  %v2072_v45 = vadd.f32 %v2071_v27, %v2049_v9  ;;  %v2006_v35 = vadd.f32 %v2005_v57, %v1799_v42  ;;  %v2074_v36 = vpop.f32.mrf.mxu3 }
 0x247   : > { %v2091_v23 = vadd.f32 %v3494_v26, %v2072_v45  ;;  %v2030_v24 = vpop.f32.mrf.mxu1  ;;  %v2029_v44 = vadd.f32 %v2028_v0, %v2006_v35 }
 0x249   : > { %v2101_v11 = vmax.f32 %v2091_v23, 0.0  ;;  %v2092_v53 = vadd.f32 %v3492_v50, %v2029_v44 }
 0x24a   : > { %v2051_v21 = vpop.f32.mrf.mxu2 }
 0x24b   : > { %v2107_v48 = vpack.c.bf16 %v2101_v11, %v2100_v37  ;;  %v2052_v52 = vadd.f32 %v2051_v21, %v3487_v43  ;;  %v2102_v60 = vmax.f32 %v2092_v53, 0.0 }
 0x24c   : > { %v2007_v38 = vpop.f32.mrf.mxu0 }
 0x24d   : > { %2112 = vst [vmem:[%s3502_s17 + $0x18] sm:$0xff] %v2107_v48  ;;  %v2075_v54 = vadd.f32 %v2074_v36, %v2052_v52  ;;  %v2076_v59 = vpop.f32.mrf.mxu3 }
 0x24f   : > { %v2093_v42 = vadd.f32 %v3494_v26, %v2075_v54 }
 0x251   : > { %v2103_v55 = vmax.f32 %v2093_v42, 0.0 }
 0x252   : > { %v2053_v56 = vpop.f32.mrf.mxu2 }
 0x253   : > { %v2108_v51 = vpack.c.bf16 %v2103_v55, %v2102_v60 }
 0x255   : > { %2113 = vst [vmem:[%s3502_s17 + $0x20] sm:$0xff] %v2108_v51 }
 0x256 PF: > { %s20_s29 = sadd.s32 1, %s3146_s29   ;;  %s3538_s27 = smov %s3142_s28 }
 0x257   : > { %p17_p8 = scmp.ge.s32.totalorder %s20_s29, 4   ;;  %s3539_s28 = smov %s3541_s9 }
 0x259   :  { %19 = sbr.rel (!%p17_p8) target bundleno = 3 (0x3), region = 94 }
 0x25e   :  { %2146 = vsyncpa [#allocation5], 1 }
 0x25f   :  { %2148 = vsyncpa [#allocation5 + $0x1], 1 }
 0x260   :  { %2149 = vsyncpa [#allocation7], 1 }

</bundles_post_ra>
